<compile_context>
chip_gen: v6e
topology: v6e:2x2x1
jax: 0.10.0
libtpu: 0.0.40
codegen_flags: <defaults>
</compile_context>

<pallas_src>
import numpy as np
import jax
import jax.numpy as jnp
from jax.experimental import pallas as pl
from jax.experimental.pallas import tpu as pltpu

# ---- configuration (lane/sublane friendly) -----------------------------------
BATCH       = 256                     # total samples
MAX_TILE_M  = 512                     # cap on batch tile per grid step
IN_FEATURES = 16                      # module's input_size
N_TREES     = 16                      # synthetic n_estimators
DEPTH       = 4
N_NODES     = 2 ** DEPTH - 1          # 15 real internal nodes per tree
NODES_PAD   = 16                      # pad to 16 -> 16*16 = 256 node lanes
N_LEAVES    = 2 ** DEPTH              # 16 leaves per tree -> 256 leaf lanes
NODE_LANES  = N_TREES * NODES_PAD     # 256
LEAF_LANES  = N_TREES * N_LEAVES      # 256


# ---- Pallas kernel -----------------------------------------------------------
def rf_kernel(x_ref, w_ref, thr_ref, path_ref, bias_ref, leafv_ref, o_ref):
    # x:     (TILE_M, IN) f32          W:    (IN, NODE_LANES) f32 one-hot feature select
    # thr:   (1, NODE_LANES) f32       PATH: (NODE_LANES, LEAF_LANES) bf16 in {-1,0,+1}
    # bias:  (1, LEAF_LANES) f32       LEAFV:(1, LEAF_LANES) f32, leaf probs / N_TREES
    x = x_ref[...]
    # gather each (tree, node) split feature via one-hot matmul -> (TILE_M, NODE_LANES)
    node_vals = jnp.dot(x, w_ref[...], preferred_element_type=jnp.float32)
    # split decisions in f32, then exact-valued bf16 {0,1} for the MXU
    s = (node_vals > thr_ref[...]).astype(jnp.bfloat16)
    # per-leaf "conditions satisfied" count: s . PATH (bf16 in, f32 acc) + #left turns
    counts = jnp.dot(s, path_ref[...], preferred_element_type=jnp.float32) + bias_ref[...]
    # leaf reached iff all DEPTH conditions hold (counts == DEPTH, exact small ints)
    sel = (counts > (DEPTH - 0.5)).astype(jnp.float32)        # (TILE_M, LEAF_LANES)
    # exactly one leaf per tree selected; LEAFV already scaled by 1/N_TREES.
    # VPU multiply + XLU row-reduce -> (TILE_M, 1); tiny masked store is cheaper
    # than the old f32 (256x128) matmul + 128-lane writeback + wrapper slice.
    o_ref[...] = jnp.sum(sel * leafv_ref[...], axis=-1, keepdims=True)


def random_forest_predict_proba(x, w, thr, path, bias, leafv):
    B = x.shape[0]
    tile_m = B if B <= MAX_TILE_M else MAX_TILE_M
    assert B % tile_m == 0
    grid = (B // tile_m,)
    # Only ask for a megacore split when there is more than one tile to split.
    dims = ("parallel",) if grid[0] >= 2 else ("arbitrary",)

    flops = 2 * B * (IN_FEATURES * NODE_LANES + NODE_LANES * LEAF_LANES + LEAF_LANES)
    bytes_accessed = (B * IN_FEATURES * 4
                      + IN_FEATURES * NODE_LANES * 4
                      + NODE_LANES * 4
                      + NODE_LANES * LEAF_LANES * 2
                      + 2 * LEAF_LANES * 4
                      + B * 4)
    out = pl.pallas_call(
        rf_kernel,
        out_shape=jax.ShapeDtypeStruct((B, 1), jnp.float32),
        grid=grid,
        in_specs=[
            pl.BlockSpec((tile_m, IN_FEATURES),       lambda i: (i, 0)),  # x (tiled)
            pl.BlockSpec((IN_FEATURES, NODE_LANES),   lambda i: (0, 0)),  # W (resident)
            pl.BlockSpec((1, NODE_LANES),             lambda i: (0, 0)),  # thresholds
            pl.BlockSpec((NODE_LANES, LEAF_LANES),    lambda i: (0, 0)),  # PATH
            pl.BlockSpec((1, LEAF_LANES),             lambda i: (0, 0)),  # BIAS
            pl.BlockSpec((1, LEAF_LANES),             lambda i: (0, 0)),  # LEAFV
        ],
        out_specs=pl.BlockSpec((tile_m, 1),           lambda i: (i, 0)),
        compiler_params=pltpu.CompilerParams(dimension_semantics=dims),
        cost_estimate=pl.CostEstimate(
            flops=flops, transcendentals=0, bytes_accessed=bytes_accessed),
    )(x, w, thr, path, bias, leafv)
    return out.reshape(B)   # shape (B,), matches predict_proba(x)[:, 1]


# ---- deterministic synthetic forest parameters -------------------------------
def build_forest_params(key):
    kf, kt, kl = jax.random.split(key, 3)
    feat  = np.asarray(jax.random.randint(kf, (N_TREES, N_NODES), 0, IN_FEATURES))
    thr   = np.asarray(jax.random.normal(kt, (N_TREES, N_NODES), dtype=jnp.float32))
    leafp = np.asarray(jax.random.uniform(kl, (N_TREES, N_LEAVES), dtype=jnp.float32))

    # one-hot feature-selection matrix; dummy pad node: zero column + huge threshold
    W   = np.zeros((IN_FEATURES, NODE_LANES), np.float32)
    THR = np.full((1, NODE_LANES), 1e9, np.float32)
    for t in range(N_TREES):
        for n in range(N_NODES):
            W[feat[t, n], t * NODES_PAD + n] = 1.0
            THR[0, t * NODES_PAD + n] = thr[t, n]

    # path matrix A (leaf x node) for a complete binary tree (same for every tree)
    # A[l, n] = +1 if leaf l goes right at node n, -1 if left, 0 if n not on path
    A = np.zeros((N_LEAVES, N_NODES), np.float32)
    c = np.zeros((N_LEAVES,), np.float32)     # number of left turns per leaf
    for leaf in range(N_LEAVES):
        node = 0
        for d in range(DEPTH):
            bit = (leaf >> (DEPTH - 1 - d)) & 1
            A[leaf, node] = 1.0 if bit else -1.0
            if not bit:
                c[leaf] += 1.0
            node = 2 * node + 1 + bit

    # block-diagonal expansion across trees
    PATH  = np.zeros((NODE_LANES, LEAF_LANES), np.float32)
    BIAS  = np.zeros((1, LEAF_LANES), np.float32)
    LEAFV = np.zeros((1, LEAF_LANES), np.float32)   # pre-scaled by 1/N_TREES
    for t in range(N_TREES):
        PATH[t * NODES_PAD: t * NODES_PAD + N_NODES,
             t * N_LEAVES: (t + 1) * N_LEAVES] = A.T
        BIAS[0, t * N_LEAVES: (t + 1) * N_LEAVES] = c
        LEAFV[0, t * N_LEAVES: (t + 1) * N_LEAVES] = leafp[t] / N_TREES

    dev = (jnp.asarray(W),
           jnp.asarray(THR),
           jnp.asarray(PATH, dtype=jnp.bfloat16),   # {-1,0,+1}: exact in bf16
           jnp.asarray(BIAS),
           jnp.asarray(LEAFV))
    return (feat, thr, leafp), dev


# ---- pure-numpy reference: explicit tree traversal ---------------------------
def ref_predict_proba(x_np, feat, thr, leafp):
    B = x_np.shape[0]
    out = np.zeros((B,), np.float32)
    for b in range(B):
        acc = 0.0
        for t in range(N_TREES):
            node = 0
            for _ in range(DEPTH):
                go_right = x_np[b, feat[t, node]] > thr[t, node]
                node = 2 * node + 1 + int(go_right)
            acc += leafp[t, node - N_NODES]
        out[b] = acc / N_TREES
    return out


if __name__ == "__main__":
    key = jax.random.PRNGKey(0)
    kx, kp = jax.random.split(key)
    x = jax.random.normal(kx, (BATCH, IN_FEATURES), dtype=jnp.float32)

    (feat, thr, leafp), (W, THR, PATH, BIAS, LEAFV) = build_forest_params(kp)

    proba = random_forest_predict_proba(x, W, THR, PATH, BIAS, LEAFV)
    proba = jax.block_until_ready(proba)

    ref = ref_predict_proba(np.asarray(x), feat, thr, leafp)
    assert proba.shape == (BATCH,)
    np.testing.assert_allclose(np.asarray(proba), ref, atol=1e-5, rtol=1e-5)

    print("KERNEL_OK")
</pallas_src>

<mosaic_0001>
module attributes {stable_mosaic.version = 11 : i64} {
  func.func @rf_kernel(%arg0: i32, %arg1: memref<256x16xf32, #tpu.memory_space<vmem>>, %arg2: memref<16x256xf32, #tpu.memory_space<vmem>>, %arg3: memref<1x256xf32, #tpu.memory_space<vmem>>, %arg4: memref<256x256xbf16, #tpu.memory_space<vmem>>, %arg5: memref<1x256xf32, #tpu.memory_space<vmem>>, %arg6: memref<1x256xf32, #tpu.memory_space<vmem>>, %arg7: memref<256x1xf32, #tpu.memory_space<vmem>>) attributes {dimension_semantics = [#tpu.dimension_semantics<arbitrary>], iteration_bounds = array<i64: 1>, scalar_prefetch = 0 : i64, scratch_operands = 0 : i64, tpu.core_type = #tpu.core_type<tc>, window_params = [{transform_indices = @transform_0, window_bounds = array<i64: 256, 16>}, {pipeline_mode = #tpu.pipeline_mode<synchronous>, transform_indices = @transform_1, window_bounds = array<i64: 16, 256>}, {pipeline_mode = #tpu.pipeline_mode<synchronous>, transform_indices = @transform_2, window_bounds = array<i64: 1, 256>}, {pipeline_mode = #tpu.pipeline_mode<synchronous>, transform_indices = @transform_3, window_bounds = array<i64: 256, 256>}, {pipeline_mode = #tpu.pipeline_mode<synchronous>, transform_indices = @transform_4, window_bounds = array<i64: 1, 256>}, {pipeline_mode = #tpu.pipeline_mode<synchronous>, transform_indices = @transform_5, window_bounds = array<i64: 1, 256>}, {transform_indices = @transform_6, window_bounds = array<i64: 256, 1>}]} {
    %c0 = arith.constant 0 : index
    %c0_0 = arith.constant 0 : index
    %0 = vector.load %arg1[%c0, %c0_0] : memref<256x16xf32, #tpu.memory_space<vmem>>, vector<256x16xf32>
    %c0_1 = arith.constant 0 : index
    %c0_2 = arith.constant 0 : index
    %1 = vector.load %arg2[%c0_1, %c0_2] : memref<16x256xf32, #tpu.memory_space<vmem>>, vector<16x256xf32>
    %cst = arith.constant dense<0.000000e+00> : vector<256x256xf32>
    %2 = tpu.matmul %0, %1, %cst {dimension_numbers = #tpu.dot_dimension_numbers<[1], [0], [0], [1], [0, 0, 1, 1], [], []>} : vector<256x16xf32>, vector<16x256xf32>, vector<256x256xf32> -> vector<256x256xf32>
    %c0_3 = arith.constant 0 : index
    %c0_4 = arith.constant 0 : index
    %3 = vector.load %arg3[%c0_3, %c0_4] : memref<1x256xf32, #tpu.memory_space<vmem>>, vector<1x256xf32>
    %4 = vector.broadcast %3 : vector<1x256xf32> to vector<256x256xf32>
    %5 = arith.cmpf ogt, %2, %4 : vector<256x256xf32>
    %6 = arith.extui %5 : vector<256x256xi1> to vector<256x256xi32>
    %7 = arith.sitofp %6 : vector<256x256xi32> to vector<256x256xf32>
    %8 = arith.truncf %7 : vector<256x256xf32> to vector<256x256xbf16>
    %c0_5 = arith.constant 0 : index
    %c0_6 = arith.constant 0 : index
    %9 = vector.load %arg4[%c0_5, %c0_6] : memref<256x256xbf16, #tpu.memory_space<vmem>>, vector<256x256xbf16>
    %cst_7 = arith.constant dense<0.000000e+00> : vector<256x256xf32>
    %10 = tpu.matmul %8, %9, %cst_7 {dimension_numbers = #tpu.dot_dimension_numbers<[1], [0], [0], [1], [0, 0, 1, 1], [], []>} : vector<256x256xbf16>, vector<256x256xbf16>, vector<256x256xf32> -> vector<256x256xf32>
    %c0_8 = arith.constant 0 : index
    %c0_9 = arith.constant 0 : index
    %11 = vector.load %arg5[%c0_8, %c0_9] : memref<1x256xf32, #tpu.memory_space<vmem>>, vector<1x256xf32>
    %12 = vector.broadcast %11 : vector<1x256xf32> to vector<256x256xf32>
    %13 = arith.addf %10, %12 : vector<256x256xf32>
    %cst_10 = arith.constant 3.500000e+00 : f32
    %14 = vector.broadcast %cst_10 : f32 to vector<256x256xf32>
    %15 = arith.cmpf ogt, %13, %14 : vector<256x256xf32>
    %16 = arith.extui %15 : vector<256x256xi1> to vector<256x256xi32>
    %17 = arith.sitofp %16 : vector<256x256xi32> to vector<256x256xf32>
    %c0_11 = arith.constant 0 : index
    %c0_12 = arith.constant 0 : index
    %18 = vector.load %arg6[%c0_11, %c0_12] : memref<1x256xf32, #tpu.memory_space<vmem>>, vector<1x256xf32>
    %19 = vector.broadcast %18 : vector<1x256xf32> to vector<256x256xf32>
    %20 = arith.mulf %17, %19 : vector<256x256xf32>
    %cst_13 = arith.constant dense<0.000000e+00> : vector<256xf32>
    %21 = vector.multi_reduction <add>, %20, %cst_13 [1] : vector<256x256xf32> to vector<256xf32>
    %22 = vector.shape_cast %21 : vector<256xf32> to vector<256x1xf32>
    %c0_14 = arith.constant 0 : index
    %c0_15 = arith.constant 0 : index
    %23 = vector.load %arg7[%c0_14, %c0_15] : memref<256x1xf32, #tpu.memory_space<vmem>>, vector<256x1xf32>
    tpu.vector_store %arg7[%c0_14, %c0_15], %22 {strides = array<i32>} : memref<256x1xf32, #tpu.memory_space<vmem>>, vector<256x1xf32>,
    return
  }
  func.func @transform_0(%arg0: i32) -> (i32, i32) {
    %c0_i32 = arith.constant 0 : i32
    %c0_i32_0 = arith.constant 0 : i32
    return %arg0, %c0_i32 : i32, i32
  }
  func.func @transform_1(%arg0: i32) -> (i32, i32) {
    %c0_i32 = arith.constant 0 : i32
    %c0_i32_0 = arith.constant 0 : i32
    %c0_i32_1 = arith.constant 0 : i32
    return %c0_i32, %c0_i32_0 : i32, i32
  }
  func.func @transform_2(%arg0: i32) -> (i32, i32) {
    %c0_i32 = arith.constant 0 : i32
    %c0_i32_0 = arith.constant 0 : i32
    %c0_i32_1 = arith.constant 0 : i32
    return %c0_i32, %c0_i32_0 : i32, i32
  }
  func.func @transform_3(%arg0: i32) -> (i32, i32) {
    %c0_i32 = arith.constant 0 : i32
    %c0_i32_0 = arith.constant 0 : i32
    %c0_i32_1 = arith.constant 0 : i32
    return %c0_i32, %c0_i32_0 : i32, i32
  }
  func.func @transform_4(%arg0: i32) -> (i32, i32) {
    %c0_i32 = arith.constant 0 : i32
    %c0_i32_0 = arith.constant 0 : i32
    %c0_i32_1 = arith.constant 0 : i32
    return %c0_i32, %c0_i32_0 : i32, i32
  }
  func.func @transform_5(%arg0: i32) -> (i32, i32) {
    %c0_i32 = arith.constant 0 : i32
    %c0_i32_0 = arith.constant 0 : i32
    %c0_i32_1 = arith.constant 0 : i32
    return %c0_i32, %c0_i32_0 : i32, i32
  }
  func.func @transform_6(%arg0: i32) -> (i32, i32) {
    %c0_i32 = arith.constant 0 : i32
    %c0_i32_0 = arith.constant 0 : i32
    return %arg0, %c0_i32 : i32, i32
  }
}

</mosaic_0001>

<bundles_post_ra>
// kernel: tpu_custom_call.1
= control target key start
LH: loop header
LB: loop body
LE: loop exit
PB: predicated region body
PF: predicated region fallthrough
CT: control target
= control target key end

     0   :  { %v1785_v3 = vmov 0.0   ;;  %vm59_vm0 = vcmask 130048   ;;  %s2537_s1 = inlined_call_operand.vmem [shape: f32[16,256], index: 1, kind: input, shape index: {}]   ;;  %s2538_s0 = inlined_call_operand.vmem [shape: f32[256,16], index: 0, kind: input, shape index: {}]   ;;  %s2539_s3 = inlined_call_operand.vmem [shape: bf16[256,256], index: 3, kind: input, shape index: {}]   ;;  %s2540_s2 = inlined_call_operand.vmem [shape: f32[1,256], index: 2, kind: input, shape index: {}]   ;;  %s2541_s4 = inlined_call_operand.vmem [shape: f32[1,256], index: 4, kind: input, shape index: {}]   ;;  %s2542_s5 = inlined_call_operand.vmem [shape: f32[1,256], index: 5, kind: input, shape index: {}]   ;;  %s2543_s6 = inlined_call_operand.vmem [shape: f32[256,1], index: 6, kind: output, shape index: {}]  }
   0x1   :  { %v58_v0 = vld [vmem:[%s2537_s1 + $0x18] sm:$0xff]  ;;  %v57_v1 = vld [vmem:[%s2537_s1 + $0x10] sm:$0xff]  ;;  %v56_v2 = vld [vmem:[%s2537_s1 + $0x8] sm:$0xff]  ;;  %220 = vmatprep.mubr.f32.mxu0 %v1785_v3 }
   0x2   :  { %184 = vmatprep.subr.mxu0 %v58_v0  ;;  %v55_v4 = vld [vmem:[%s2537_s1] sm:$0xff]  ;;  %v24_v6 = vld [vmem:[%s2538_s0 + $0x8] sm:$0xff]  ;;  %v25_v7 = vld [vmem:[%s2538_s0 + $0x10] sm:$0xff] }
   0x3   :  { %185 = vmatpush1.msra.mxu0 %v57_v1  ;;  %v23_v5 = vld [vmem:[%s2538_s0] sm:$0xff]  ;;  %v1737_v8 = vld [vmem:[%s2539_s3 + $0x70] ss:$8 sps:$4 sm:$0xff]   ;;  %v1739_v9 = vld [vmem:[%s2539_s3 + $0x74] ss:$8 sps:$4 sm:$0xff]  }
   0x4   :  { %186 = vmatprep.subr.mxu0 %v56_v2  ;;  %v26_v10 = vld [vmem:[%s2538_s0 + $0x18] sm:$0xff]  ;;  %v1742_v11 = vld [vmem:[%s2539_s3 + $0x64] ss:$8 sps:$4 sm:$0xff]   ;;  %1703 = vmatprep.subr.bf16.mxu1 %v1739_v9  ;;  %v1740_v12 = vld [vmem:[%s2539_s3 + $0x60] ss:$8 sps:$4 sm:$0xff]  }
   0x5   :  { %187 = vmatpush1.msra.mxu0 %v55_v4  ;;  %1719 = vmatpush1.bf16.msra.mxu1 %v1737_v8  ;;  %v1745_v13 = vld [vmem:[%s2539_s3 + $0x54] ss:$8 sps:$4 sm:$0xff]   ;;  %v27_v14 = vld [vmem:[%s2538_s0 + $0x20] sm:$0xff]  ;;  %v1743_v15 = vld [vmem:[%s2539_s3 + $0x50] ss:$8 sps:$4 sm:$0xff]  }
   0x6   :  { %1447 = vmatmul.mubr.msk.f32.vlgmr.msra.gmra.mxu0 %vm59_vm0, %v23_v5  ;;  %853 = vmatprep.subr.bf16.mxu0 %v1739_v9  ;;  %v1748_v16 = vld [vmem:[%s2539_s3 + $0x44] ss:$8 sps:$4 sm:$0xff]   ;;  %v1746_v18 = vld [vmem:[%s2539_s3 + $0x40] ss:$8 sps:$4 sm:$0xff]   ;;  %v1751_v19 = vld [vmem:[%s2539_s3 + $0x34] ss:$8 sps:$4 sm:$0xff]  }
   0x7   :  { %226 = vmatprep.mubr.f32.mxu0 %v1785_v3  ;;  %854 = vmatpush1.bf16.msra.mxu0 %v1737_v8  ;;  %v28_v17 = vld [vmem:[%s2538_s0 + $0x28] sm:$0xff]  ;;  %v29_v20 = vld [vmem:[%s2538_s0 + $0x30] sm:$0xff]  ;;  %v30_v23 = vld [vmem:[%s2538_s0 + $0x38] sm:$0xff] }
   0x8   :  { %855 = vmatprep.subr.bf16.mxu0 %v1742_v11  ;;  %1704 = vmatprep.subr.bf16.mxu1 %v1742_v11  ;;  %v1749_v21 = vld [vmem:[%s2539_s3 + $0x30] ss:$8 sps:$4 sm:$0xff]   ;;  %v1754_v22 = vld [vmem:[%s2539_s3 + $0x24] ss:$8 sps:$4 sm:$0xff]   ;;  %v1752_v24 = vld [vmem:[%s2539_s3 + $0x20] ss:$8 sps:$4 sm:$0xff]  }
   0x9   :  { %1720 = vmatpush1.bf16.msra.mxu1 %v1740_v12  ;;  %v1757_v25 = vld [vmem:[%s2539_s3 + $0x14] ss:$8 sps:$4 sm:$0xff]   ;;  %v31_v26 = vld [vmem:[%s2538_s0 + $0x40] sm:$0xff]  ;;  %v1755_v27 = vld [vmem:[%s2539_s3 + $0x10] ss:$8 sps:$4 sm:$0xff]  }
   0xa   :  { %1448 = vmatmul.mubr.msk.f32.gmra.mxu0 %vm59_vm0, %v24_v6  ;;  %1705 = vmatprep.subr.bf16.mxu1 %v1745_v13  ;;  %v1760_v28 = vld [vmem:[%s2539_s3 + $0x4] ss:$8 sps:$4 sm:$0xff]   ;;  %v1758_v30 = vld [vmem:[%s2539_s3] ss:$8 sps:$4 sm:$0xff]   ;;  %v1763_v31 = vld [vmem:[%s2539_s3 + $0xf4] ss:$8 sps:$4 sm:$0xff]   ;;  %v415_v6 = vlaneseq }
   0xb   :  { %232 = vmatprep.mubr.f32.mxu0 %v1785_v3  ;;  %856 = vmatpush1.bf16.msra.mxu0 %v1740_v12  ;;  %v32_v29 = vld [vmem:[%s2538_s0 + $0x48] sm:$0xff]  ;;  %v33_v32 = vld [vmem:[%s2538_s0 + $0x50] sm:$0xff]  ;;  %v34_v35 = vld [vmem:[%s2538_s0 + $0x58] sm:$0xff] }
   0xc   :  { %857 = vmatprep.subr.bf16.mxu0 %v1745_v13  ;;  %v1761_v33 = vld [vmem:[%s2539_s3 + $0xf0] ss:$8 sps:$4 sm:$0xff]   ;;  %v1766_v34 = vld [vmem:[%s2539_s3 + $0xe4] ss:$8 sps:$4 sm:$0xff]   ;;  %v1764_v36 = vld [vmem:[%s2539_s3 + $0xe0] ss:$8 sps:$4 sm:$0xff]  }
   0xd   :  { %1721 = vmatpush1.bf16.msra.mxu1 %v1743_v15  ;;  %v1769_v37 = vld [vmem:[%s2539_s3 + $0xd4] ss:$8 sps:$4 sm:$0xff]   ;;  %v35_v38 = vld [vmem:[%s2538_s0 + $0x60] sm:$0xff]  ;;  %v1767_v39 = vld [vmem:[%s2539_s3 + $0xd0] ss:$8 sps:$4 sm:$0xff]  }
   0xe   :  { %1449 = vmatmul.mubr.msk.f32.gmra.mxu0 %vm59_vm0, %v25_v7  ;;  %1706 = vmatprep.subr.bf16.mxu1 %v1748_v16  ;;  %v1772_v40 = vld [vmem:[%s2539_s3 + $0xc4] ss:$8 sps:$4 sm:$0xff]   ;;  %v1770_v42 = vld [vmem:[%s2539_s3 + $0xc0] ss:$8 sps:$4 sm:$0xff]   ;;  %v1775_v43 = vld [vmem:[%s2539_s3 + $0xb4] ss:$8 sps:$4 sm:$0xff]  }
   0xf   :  { %238 = vmatprep.mubr.f32.mxu0 %v1785_v3  ;;  %858 = vmatpush1.bf16.msra.mxu0 %v1743_v15  ;;  %v36_v41 = vld [vmem:[%s2538_s0 + $0x68] sm:$0xff]  ;;  %v37_v44 = vld [vmem:[%s2538_s0 + $0x70] sm:$0xff]  ;;  %v38_v47 = vld [vmem:[%s2538_s0 + $0x78] sm:$0xff]  ;;  %v416_v7 = vshrl.u32 %v415_v6, 7 }
  0x10   :  { %859 = vmatprep.subr.bf16.mxu0 %v1748_v16  ;;  %v1773_v45 = vld [vmem:[%s2539_s3 + $0xb0] ss:$8 sps:$4 sm:$0xff]   ;;  %v1778_v46 = vld [vmem:[%s2539_s3 + $0xa4] ss:$8 sps:$4 sm:$0xff]   ;;  %v1776_v48 = vld [vmem:[%s2539_s3 + $0xa0] ss:$8 sps:$4 sm:$0xff]  }
  0x11   :  { %1722 = vmatpush1.bf16.msra.mxu1 %v1746_v18  ;;  %v39_v49 = vld [vmem:[%s2538_s0 + $0x80] sm:$0xff]  ;;  %v1781_v50 = vld [vmem:[%s2539_s3 + $0x94] ss:$8 sps:$4 sm:$0xff]   ;;  %v40_v51 = vld [vmem:[%s2538_s0 + $0x88] sm:$0xff]  ;;  %v2090_v8 = vsub.s32 1, %v416_v7 }
  0x12   :  { %1450 = vmatmul.mubr.msk.f32.gmra.mxu0 %vm59_vm0, %v26_v10  ;;  %1707 = vmatprep.subr.bf16.mxu1 %v1751_v19  ;;  %v1779_v52 = vld [vmem:[%s2539_s3 + $0x90] ss:$8 sps:$4 sm:$0xff]   ;;  %v1784_v53 = vld [vmem:[%s2539_s3 + $0x84] ss:$8 sps:$4 sm:$0xff]   ;;  %v1782_v55 = vld [vmem:[%s2539_s3 + $0x80] ss:$8 sps:$4 sm:$0xff]  }
  0x13   :  { %244 = vmatprep.mubr.f32.mxu0 %v1785_v3  ;;  %860 = vmatpush1.bf16.msra.mxu0 %v1746_v18  ;;  %v41_v54 = vld [vmem:[%s2538_s0 + $0x90] sm:$0xff]  ;;  %v42_v56 = vld [vmem:[%s2538_s0 + $0x98] sm:$0xff]  ;;  %v43_v57 = vld [vmem:[%s2538_s0 + $0xa0] sm:$0xff]  ;;  %v2092_v10 = vsub.s32 0, %v416_v7  ;;  %v1786_v18 = vmov 1.0|1.0  }
  0x14   :  { %861 = vmatprep.subr.bf16.mxu0 %v1751_v19  ;;  %v44_v58 = vld [vmem:[%s2538_s0 + $0xa8] sm:$0xff]  ;;  %v45_v59 = vld [vmem:[%s2538_s0 + $0xb0] sm:$0xff]  ;;  %v46_v60 = vld [vmem:[%s2538_s0 + $0xb8] sm:$0xff] }
  0x15   :  { %1723 = vmatpush1.bf16.msra.mxu1 %v1749_v21  ;;  %v47_v61 = vld [vmem:[%s2538_s0 + $0xc0] sm:$0xff]  ;;  %v48_v62 = vld [vmem:[%s2538_s0 + $0xc8] sm:$0xff]  ;;  %v49_v63 = vld [vmem:[%s2538_s0 + $0xd0] sm:$0xff] }
  0x16   :  { %1451 = vmatmul.mubr.msk.f32.gmra.mxu0 %vm59_vm0, %v27_v14  ;;  %1708 = vmatprep.subr.bf16.mxu1 %v1754_v22  ;;  %v50_v0 = vld [vmem:[%s2538_s0 + $0xd8] sm:$0xff]  ;;  %v51_v1 = vld [vmem:[%s2538_s0 + $0xe0] sm:$0xff]  ;;  %v52_v2 = vld [vmem:[%s2538_s0 + $0xe8] sm:$0xff] }
  0x17   :  { %250 = vmatprep.mubr.f32.mxu0 %v1785_v3  ;;  %862 = vmatpush1.bf16.msra.mxu0 %v1749_v21  ;;  %v53_v4 = vld [vmem:[%s2538_s0 + $0xf0] sm:$0xff]  ;;  %v54_v5 = vld [vmem:[%s2538_s0 + $0xf8] sm:$0xff]  ;;  %v413_v11 = vld [vmem:[%s2540_s2] sm:$0x3] }
  0x18   :  { %863 = vmatprep.subr.bf16.mxu0 %v1754_v22  ;;  %v2098_v13 = vrot.slane %v413_v11, %v2090_v8  ;;  %v2101_v14 = vrot.slane %v413_v11, %v2092_v10 }
  0x19   :  { %1724 = vmatpush1.bf16.msra.mxu1 %v1752_v24 }
  0x1a   :  { %1452 = vmatmul.mubr.msk.f32.gmra.mxu0 %vm59_vm0, %v28_v17  ;;  %1709 = vmatprep.subr.bf16.mxu1 %v1757_v25 }
  0x1b   :  { %256 = vmatprep.mubr.f32.mxu0 %v1785_v3  ;;  %864 = vmatpush1.bf16.msra.mxu0 %v1752_v24 }
  0x1c   :  { %865 = vmatprep.subr.bf16.mxu0 %v1757_v25 }
  0x1d   :  { %1725 = vmatpush1.bf16.msra.mxu1 %v1755_v27 }
  0x1e   :  { %1453 = vmatmul.mubr.msk.f32.gmra.mxu0 %vm59_vm0, %v29_v20  ;;  %1710 = vmatprep.subr.bf16.mxu1 %v1760_v28 }
  0x1f   :  { %262 = vmatprep.mubr.f32.mxu0 %v1785_v3  ;;  %866 = vmatpush1.bf16.msra.mxu0 %v1755_v27 }
  0x20   :  { %867 = vmatprep.subr.bf16.mxu0 %v1760_v28 }
  0x21   :  { %1726 = vmatpush1.bf16.msra.mxu1 %v1758_v30 }
  0x22   :  { %1454 = vmatmul.mubr.msk.f32.gmra.mxu0 %vm59_vm0, %v30_v23  ;;  %1711 = vmatprep.subr.bf16.mxu1 %v1763_v31 }
  0x23   :  { %268 = vmatprep.mubr.f32.mxu0 %v1785_v3  ;;  %868 = vmatpush1.bf16.msra.mxu0 %v1758_v30 }
  0x24   :  { %869 = vmatprep.subr.bf16.mxu0 %v1763_v31 }
  0x25   :  { %1727 = vmatpush2.bf16.msra.mxu1 %v1761_v33 }
  0x26   :  { %1455 = vmatmul.mubr.msk.f32.gmra.mxu0 %vm59_vm0, %v31_v26  ;;  %1712 = vmatprep.subr.bf16.mxu1 %v1766_v34 }
  0x27   :  { %274 = vmatprep.mubr.f32.mxu0 %v1785_v3  ;;  %870 = vmatpush2.bf16.msra.mxu0 %v1761_v33 }
  0x28   :  { %871 = vmatprep.subr.bf16.mxu0 %v1766_v34 }
  0x29   :  { %1728 = vmatpush2.bf16.msra.mxu1 %v1764_v36 }
  0x2a   :  { %1456 = vmatmul.mubr.msk.f32.gmra.mxu0 %vm59_vm0, %v32_v29  ;;  %1713 = vmatprep.subr.bf16.mxu1 %v1769_v37 }
  0x2b   :  { %280 = vmatprep.mubr.f32.mxu0 %v1785_v3  ;;  %872 = vmatpush2.bf16.msra.mxu0 %v1764_v36 }
  0x2c   :  { %873 = vmatprep.subr.bf16.mxu0 %v1769_v37 }
  0x2d   :  { %1729 = vmatpush2.bf16.msra.mxu1 %v1767_v39 }
  0x2e   :  { %1457 = vmatmul.mubr.msk.f32.gmra.mxu0 %vm59_vm0, %v33_v32  ;;  %1714 = vmatprep.subr.bf16.mxu1 %v1772_v40 }
  0x2f   :  { %286 = vmatprep.mubr.f32.mxu0 %v1785_v3  ;;  %874 = vmatpush2.bf16.msra.mxu0 %v1767_v39 }
  0x30   :  { %875 = vmatprep.subr.bf16.mxu0 %v1772_v40 }
  0x31   :  { %1730 = vmatpush2.bf16.msra.mxu1 %v1770_v42 }
  0x32   :  { %1458 = vmatmul.mubr.msk.f32.gmra.mxu0 %vm59_vm0, %v34_v35  ;;  %1715 = vmatprep.subr.bf16.mxu1 %v1775_v43 }
  0x33   :  { %292 = vmatprep.mubr.f32.mxu0 %v1785_v3  ;;  %876 = vmatpush2.bf16.msra.mxu0 %v1770_v42 }
  0x34   :  { %877 = vmatprep.subr.bf16.mxu0 %v1775_v43 }
  0x35   :  { %1731 = vmatpush2.bf16.msra.mxu1 %v1773_v45 }
  0x36   :  { %1459 = vmatmul.mubr.msk.f32.gmra.mxu0 %vm59_vm0, %v35_v38  ;;  %1716 = vmatprep.subr.bf16.mxu1 %v1778_v46 }
  0x37   :  { %298 = vmatprep.mubr.f32.mxu0 %v1785_v3  ;;  %878 = vmatpush2.bf16.msra.mxu0 %v1773_v45 }
  0x38   :  { %879 = vmatprep.subr.bf16.mxu0 %v1778_v46 }
  0x39   :  { %1732 = vmatpush2.bf16.msra.mxu1 %v1776_v48 }
  0x3a   :  { %1460 = vmatmul.mubr.msk.f32.gmra.mxu0 %vm59_vm0, %v36_v41  ;;  %1717 = vmatprep.subr.bf16.mxu1 %v1781_v50 }
  0x3b   :  { %304 = vmatprep.mubr.f32.mxu0 %v1785_v3  ;;  %880 = vmatpush2.bf16.msra.mxu0 %v1776_v48 }
  0x3c   :  { %881 = vmatprep.subr.bf16.mxu0 %v1781_v50 }
  0x3d   :  { %1733 = vmatpush2.bf16.msra.mxu1 %v1779_v52 }
  0x3e   :  { %1461 = vmatmul.mubr.msk.f32.gmra.mxu0 %vm59_vm0, %v37_v44  ;;  %1718 = vmatprep.subr.bf16.mxu1 %v1784_v53 }
  0x3f   :  { %310 = vmatprep.mubr.f32.mxu0 %v1785_v3  ;;  %882 = vmatpush2.bf16.msra.mxu0 %v1779_v52 }
  0x40   :  { %883 = vmatprep.subr.bf16.mxu0 %v1784_v53 }
  0x41   :  { %1734 = vmatpush2.bf16.msra.mxu1 %v1782_v55 }
  0x42   :  { %1462 = vmatmul.mubr.msk.f32.gmra.mxu0 %vm59_vm0, %v38_v47 }
  0x43   :  { %316 = vmatprep.mubr.f32.mxu0 %v1785_v3  ;;  %884 = vmatpush2.bf16.msra.mxu0 %v1782_v55 }
  0x46   :  { %1463 = vmatmul.mubr.msk.f32.gmra.mxu0 %vm59_vm0, %v39_v49 }
  0x47   :  { %322 = vmatprep.mubr.f32.mxu0 %v1785_v3 }
  0x4a   :  { %1464 = vmatmul.mubr.msk.f32.gmra.mxu0 %vm59_vm0, %v40_v51 }
  0x4b   :  { %328 = vmatprep.mubr.f32.mxu0 %v1785_v3 }
  0x4e   :  { %1465 = vmatmul.mubr.msk.f32.gmra.mxu0 %vm59_vm0, %v41_v54 }
  0x4f   :  { %334 = vmatprep.mubr.f32.mxu0 %v1785_v3 }
  0x52   :  { %1466 = vmatmul.mubr.msk.f32.gmra.mxu0 %vm59_vm0, %v42_v56 }
  0x53   :  { %340 = vmatprep.mubr.f32.mxu0 %v1785_v3 }
  0x56   :  { %1467 = vmatmul.mubr.msk.f32.gmra.mxu0 %vm59_vm0, %v43_v57 }
  0x57   :  { %346 = vmatprep.mubr.f32.mxu0 %v1785_v3 }
  0x5a   :  { %1468 = vmatmul.mubr.msk.f32.gmra.mxu0 %vm59_vm0, %v44_v58 }
  0x5b   :  { %352 = vmatprep.mubr.f32.mxu0 %v1785_v3 }
  0x5e   :  { %1469 = vmatmul.mubr.msk.f32.gmra.mxu0 %vm59_vm0, %v45_v59 }
  0x5f   :  { %358 = vmatprep.mubr.f32.mxu0 %v1785_v3 }
  0x62   :  { %1470 = vmatmul.mubr.msk.f32.gmra.mxu0 %vm59_vm0, %v46_v60 }
  0x63   :  { %364 = vmatprep.mubr.f32.mxu0 %v1785_v3 }
  0x66   :  { %1471 = vmatmul.mubr.msk.f32.gmra.mxu0 %vm59_vm0, %v47_v61 }
  0x67   :  { %370 = vmatprep.mubr.f32.mxu0 %v1785_v3 }
  0x6a   :  { %1472 = vmatmul.mubr.msk.f32.gmra.mxu0 %vm59_vm0, %v48_v62 }
  0x6b   :  { %376 = vmatprep.mubr.f32.mxu0 %v1785_v3 }
  0x6e   :  { %1473 = vmatmul.mubr.msk.f32.gmra.mxu0 %vm59_vm0, %v49_v63 }
  0x6f   :  { %382 = vmatprep.mubr.f32.mxu0 %v1785_v3 }
  0x72   :  { %1474 = vmatmul.mubr.msk.f32.gmra.mxu0 %vm59_vm0, %v50_v0 }
  0x73   :  { %388 = vmatprep.mubr.f32.mxu0 %v1785_v3 }
  0x76   :  { %1475 = vmatmul.mubr.msk.f32.gmra.mxu0 %vm59_vm0, %v51_v1 }
  0x77   :  { %394 = vmatprep.mubr.f32.mxu0 %v1785_v3 }
  0x7a   :  { %1476 = vmatmul.mubr.msk.f32.gmra.mxu0 %vm59_vm0, %v52_v2 }
  0x7b   :  { %400 = vmatprep.mubr.f32.mxu0 %v1785_v3 }
  0x7e   :  { %1477 = vmatmul.mubr.msk.f32.gmra.mxu0 %vm59_vm0, %v53_v4 }
  0x7f   :  { %406 = vmatprep.mubr.f32.mxu0 %v1785_v3 }
  0x82   :  { %1478 = vmatmul.mubr.msk.f32.gmra.mxu0 %vm59_vm0, %v54_v5 }
  0xc6   :  { %v222_v9 = vpop.f32.mrf.mxu0 }
  0xc7   :  { %vm425_vm4 = vcmp.gt.f32.partialorder %v222_v9, %v2101_v14 }
  0xc8   :  { %v224_v12 = vpop.f32.mrf.mxu0 }
  0xc9   :  { %vm426_vm2 = vcmp.gt.f32.partialorder %v224_v12, %v2098_v13 }
  0xca   :  { %v228_v15 = vpop.f32.mrf.mxu0 }
  0xcb   :  { %vm427_vm1 = vcmp.gt.f32.partialorder %v228_v15, %v2101_v14 }
  0xcc   :  { %v230_v16 = vpop.f32.mrf.mxu0  ;;  %vm1577_vm6 = vmpackc.low %vm427_vm1, %vm425_vm4 }
  0xcd   :  { %vm428_vm3 = vcmp.gt.f32.partialorder %v230_v16, %v2098_v13 }
  0xce   :  { %vm1575_vm5 = vmpackc.low %vm428_vm3, %vm426_vm2  ;;  %v234_v17 = vpop.f32.mrf.mxu0 }
  0xcf   :  { %1576 = vmatprep.mubr.msk.bf16.mxu0 %vm1575_vm5, %v1786_v18  ;;  %vm429_vm10 = vcmp.gt.f32.partialorder %v234_v17, %v2101_v14 }
  0xd0   :  { %v236_v19 = vpop.f32.mrf.mxu0  ;;  %1578 = vmatmul.mubr.msk.bf16.vlgmr.msra.gmra.mxu0 %vm1577_vm6, %v1786_v18 }
  0xd1   :  { %vm430_vm8 = vcmp.gt.f32.partialorder %v236_v19, %v2098_v13 }
  0xd2   :  { %v240_v20 = vpop.f32.mrf.mxu0 }
  0xd3   :  { %vm431_vm7 = vcmp.gt.f32.partialorder %v240_v20, %v2101_v14  ;;  %v681_v20 = vld [vmem:[%s2541_s4] sm:$0x3] }
  0xd4   :  { %v242_v21 = vpop.f32.mrf.mxu0  ;;  %vm1581_vm12 = vmpackc.low %vm431_vm7, %vm429_vm10 }
  0xd5   :  { %vm432_vm9 = vcmp.gt.f32.partialorder %v242_v21, %v2098_v13  ;;  %v2203_v21 = vrot.slane %v681_v20, %v2092_v10 }
  0xd6   :  { %vm1579_vm11 = vmpackc.low %vm432_vm9, %vm430_vm8  ;;  %v246_v22 = vpop.f32.mrf.mxu0 }
  0xd7   :  { %1580 = vmatprep.mubr.msk.bf16.mxu0 %vm1579_vm11, %v1786_v18  ;;  %vm433_vm0 = vcmp.gt.f32.partialorder %v246_v22, %v2101_v14  ;;  %v2206_v22 = vrot.slane %v681_v20, %v2090_v8 }
  0xd8   :  { %v248_v23 = vpop.f32.mrf.mxu0  ;;  %1582 = vmatmul.mubr.msk.bf16.gmra.mxu0 %vm1581_vm12, %v1786_v18 }
  0xd9   :  { %vm434_vm14 = vcmp.gt.f32.partialorder %v248_v23, %v2098_v13 }
  0xda   :  { %v252_v24 = vpop.f32.mrf.mxu0 }
  0xdb   :  { %vm435_vm13 = vcmp.gt.f32.partialorder %v252_v24, %v2101_v14 }
  0xdc   :  { %v254_v25 = vpop.f32.mrf.mxu0  ;;  %vm1585_vm2 = vmpackc.low %vm435_vm13, %vm433_vm0 }
  0xdd   :  { %vm436_vm15 = vcmp.gt.f32.partialorder %v254_v25, %v2098_v13 }
  0xde   :  { %vm1583_vm1 = vmpackc.low %vm436_vm15, %vm434_vm14  ;;  %v258_v26 = vpop.f32.mrf.mxu0 }
  0xdf   :  { %1584 = vmatprep.mubr.msk.bf16.mxu0 %vm1583_vm1, %v1786_v18  ;;  %vm437_vm6 = vcmp.gt.f32.partialorder %v258_v26, %v2101_v14 }
  0xe0   :  { %v260_v27 = vpop.f32.mrf.mxu0  ;;  %1586 = vmatmul.mubr.msk.bf16.gmra.mxu0 %vm1585_vm2, %v1786_v18 }
  0xe1   :  { %vm438_vm4 = vcmp.gt.f32.partialorder %v260_v27, %v2098_v13 }
  0xe2   :  { %v264_v28 = vpop.f32.mrf.mxu0 }
  0xe3   :  { %vm439_vm3 = vcmp.gt.f32.partialorder %v264_v28, %v2101_v14 }
  0xe4   :  { %v266_v29 = vpop.f32.mrf.mxu0  ;;  %vm1589_vm8 = vmpackc.low %vm439_vm3, %vm437_vm6 }
  0xe5   :  { %vm440_vm5 = vcmp.gt.f32.partialorder %v266_v29, %v2098_v13 }
  0xe6   :  { %v270_v30 = vpop.f32.mrf.mxu0  ;;  %vm1587_vm7 = vmpackc.low %vm440_vm5, %vm438_vm4 }
  0xe7   :  { %1588 = vmatprep.mubr.msk.bf16.mxu1 %vm1587_vm7, %v1786_v18  ;;  %vm441_vm12 = vcmp.gt.f32.partialorder %v270_v30, %v2101_v14 }
  0xe8   :  { %v272_v31 = vpop.f32.mrf.mxu0  ;;  %1590 = vmatmul.mubr.msk.bf16.vlgmr.msra.gmra.mxu1 %vm1589_vm8, %v1786_v18 }
  0xe9   :  { %vm442_vm10 = vcmp.gt.f32.partialorder %v272_v31, %v2098_v13 }
  0xea   :  { %v276_v32 = vpop.f32.mrf.mxu0 }
  0xeb   :  { %vm443_vm9 = vcmp.gt.f32.partialorder %v276_v32, %v2101_v14 }
  0xec   :  { %v278_v33 = vpop.f32.mrf.mxu0  ;;  %vm1593_vm14 = vmpackc.low %vm443_vm9, %vm441_vm12 }
  0xed   :  { %vm444_vm11 = vcmp.gt.f32.partialorder %v278_v33, %v2098_v13 }
  0xee   :  { %vm1591_vm13 = vmpackc.low %vm444_vm11, %vm442_vm10  ;;  %v282_v34 = vpop.f32.mrf.mxu0 }
  0xef   :  { %1592 = vmatprep.mubr.msk.bf16.mxu1 %vm1591_vm13, %v1786_v18  ;;  %vm445_vm2 = vcmp.gt.f32.partialorder %v282_v34, %v2101_v14 }
  0xf0   :  { %v284_v35 = vpop.f32.mrf.mxu0  ;;  %1594 = vmatmul.mubr.msk.bf16.gmra.mxu1 %vm1593_vm14, %v1786_v18 }
  0xf1   :  { %vm446_vm0 = vcmp.gt.f32.partialorder %v284_v35, %v2098_v13 }
  0xf2   :  { %v288_v36 = vpop.f32.mrf.mxu0 }
  0xf3   :  { %vm447_vm15 = vcmp.gt.f32.partialorder %v288_v36, %v2101_v14 }
  0xf4   :  { %v290_v37 = vpop.f32.mrf.mxu0  ;;  %vm1597_vm4 = vmpackc.low %vm447_vm15, %vm445_vm2 }
  0xf5   :  { %vm448_vm1 = vcmp.gt.f32.partialorder %v290_v37, %v2098_v13 }
  0xf6   :  { %vm1595_vm3 = vmpackc.low %vm448_vm1, %vm446_vm0  ;;  %v294_v38 = vpop.f32.mrf.mxu0 }
  0xf7   :  { %1596 = vmatprep.mubr.msk.bf16.mxu1 %vm1595_vm3, %v1786_v18  ;;  %vm449_vm8 = vcmp.gt.f32.partialorder %v294_v38, %v2101_v14 }
  0xf8   :  { %v296_v39 = vpop.f32.mrf.mxu0  ;;  %1598 = vmatmul.mubr.msk.bf16.gmra.mxu1 %vm1597_vm4, %v1786_v18 }
  0xf9   :  { %vm450_vm6 = vcmp.gt.f32.partialorder %v296_v39, %v2098_v13 }
  0xfa   :  { %v300_v40 = vpop.f32.mrf.mxu0 }
  0xfb   :  { %vm451_vm5 = vcmp.gt.f32.partialorder %v300_v40, %v2101_v14 }
  0xfc   :  { %v302_v41 = vpop.f32.mrf.mxu0  ;;  %vm1601_vm10 = vmpackc.low %vm451_vm5, %vm449_vm8 }
  0xfd   :  { %vm452_vm7 = vcmp.gt.f32.partialorder %v302_v41, %v2098_v13 }
  0xfe   :  { %vm1599_vm9 = vmpackc.low %vm452_vm7, %vm450_vm6  ;;  %v306_v42 = vpop.f32.mrf.mxu0 }
  0xff   :  { %1600 = vmatprep.mubr.msk.bf16.mxu1 %vm1599_vm9, %v1786_v18  ;;  %vm453_vm14 = vcmp.gt.f32.partialorder %v306_v42, %v2101_v14 }
 0x100   :  { %v308_v43 = vpop.f32.mrf.mxu0  ;;  %1602 = vmatmul.mubr.msk.bf16.gmra.mxu1 %vm1601_vm10, %v1786_v18 }
 0x101   :  { %vm454_vm12 = vcmp.gt.f32.partialorder %v308_v43, %v2098_v13 }
 0x102   :  { %v312_v44 = vpop.f32.mrf.mxu0 }
 0x103   :  { %vm455_vm11 = vcmp.gt.f32.partialorder %v312_v44, %v2101_v14 }
 0x104   :  { %v314_v45 = vpop.f32.mrf.mxu0  ;;  %vm1605_vm0 = vmpackc.low %vm455_vm11, %vm453_vm14 }
 0x105   :  { %vm456_vm13 = vcmp.gt.f32.partialorder %v314_v45, %v2098_v13 }
 0x106   :  { %vm1603_vm15 = vmpackc.low %vm456_vm13, %vm454_vm12  ;;  %v318_v46 = vpop.f32.mrf.mxu0 }
 0x107   :  { %1604 = vmatprep.mubr.msk.bf16.mxu1 %vm1603_vm15, %v1786_v18  ;;  %vm457_vm4 = vcmp.gt.f32.partialorder %v318_v46, %v2101_v14 }
 0x108   :  { %v320_v47 = vpop.f32.mrf.mxu0  ;;  %1606 = vmatmul.mubr.msk.bf16.gmra.mxu1 %vm1605_vm0, %v1786_v18 }
 0x109   :  { %vm458_vm2 = vcmp.gt.f32.partialorder %v320_v47, %v2098_v13 }
 0x10a   :  { %v324_v48 = vpop.f32.mrf.mxu0 }
 0x10b   :  { %vm459_vm1 = vcmp.gt.f32.partialorder %v324_v48, %v2101_v14 }
 0x10c   :  { %v326_v49 = vpop.f32.mrf.mxu0  ;;  %vm1609_vm6 = vmpackc.low %vm459_vm1, %vm457_vm4 }
 0x10d   :  { %vm460_vm3 = vcmp.gt.f32.partialorder %v326_v49, %v2098_v13 }
 0x10e   :  { %vm1607_vm5 = vmpackc.low %vm460_vm3, %vm458_vm2  ;;  %v330_v50 = vpop.f32.mrf.mxu0 }
 0x10f   :  { %1608 = vmatprep.mubr.msk.bf16.mxu1 %vm1607_vm5, %v1786_v18  ;;  %vm461_vm10 = vcmp.gt.f32.partialorder %v330_v50, %v2101_v14 }
 0x110   :  { %v332_v51 = vpop.f32.mrf.mxu0  ;;  %1610 = vmatmul.mubr.msk.bf16.gmra.mxu1 %vm1609_vm6, %v1786_v18 }
 0x111   :  { %vm462_vm8 = vcmp.gt.f32.partialorder %v332_v51, %v2098_v13 }
 0x112   :  { %v336_v52 = vpop.f32.mrf.mxu0 }
 0x113   :  { %vm463_vm7 = vcmp.gt.f32.partialorder %v336_v52, %v2101_v14 }
 0x114   :  { %v338_v53 = vpop.f32.mrf.mxu0  ;;  %vm1613_vm12 = vmpackc.low %vm463_vm7, %vm461_vm10 }
 0x115   :  { %vm464_vm9 = vcmp.gt.f32.partialorder %v338_v53, %v2098_v13 }
 0x116   :  { %vm1611_vm11 = vmpackc.low %vm464_vm9, %vm462_vm8  ;;  %v342_v54 = vpop.f32.mrf.mxu0 }
 0x117   :  { %1612 = vmatprep.mubr.msk.bf16.mxu1 %vm1611_vm11, %v1786_v18  ;;  %vm465_vm0 = vcmp.gt.f32.partialorder %v342_v54, %v2101_v14 }
 0x118   :  { %v344_v55 = vpop.f32.mrf.mxu0  ;;  %1614 = vmatmul.mubr.msk.bf16.gmra.mxu1 %vm1613_vm12, %v1786_v18 }
 0x119   :  { %vm466_vm14 = vcmp.gt.f32.partialorder %v344_v55, %v2098_v13 }
 0x11a   :  { %v348_v56 = vpop.f32.mrf.mxu0 }
 0x11b   :  { %vm467_vm13 = vcmp.gt.f32.partialorder %v348_v56, %v2101_v14 }
 0x11c   :  { %v350_v57 = vpop.f32.mrf.mxu0  ;;  %vm1617_vm2 = vmpackc.low %vm467_vm13, %vm465_vm0 }
 0x11d   :  { %vm468_vm15 = vcmp.gt.f32.partialorder %v350_v57, %v2098_v13 }
 0x11e   :  { %vm1615_vm1 = vmpackc.low %vm468_vm15, %vm466_vm14  ;;  %v354_v58 = vpop.f32.mrf.mxu0 }
 0x11f   :  { %1616 = vmatprep.mubr.msk.bf16.mxu1 %vm1615_vm1, %v1786_v18  ;;  %vm469_vm6 = vcmp.gt.f32.partialorder %v354_v58, %v2101_v14 }
 0x120   :  { %v356_v59 = vpop.f32.mrf.mxu0  ;;  %1618 = vmatmul.mubr.msk.bf16.gmra.mxu1 %vm1617_vm2, %v1786_v18 }
 0x121   :  { %vm470_vm4 = vcmp.gt.f32.partialorder %v356_v59, %v2098_v13 }
 0x122   :  { %v360_v60 = vpop.f32.mrf.mxu0 }
 0x123   :  { %vm471_vm3 = vcmp.gt.f32.partialorder %v360_v60, %v2101_v14 }
 0x124   :  { %v362_v61 = vpop.f32.mrf.mxu0  ;;  %vm1621_vm8 = vmpackc.low %vm471_vm3, %vm469_vm6 }
 0x125   :  { %vm472_vm5 = vcmp.gt.f32.partialorder %v362_v61, %v2098_v13 }
 0x126   :  { %vm1619_vm7 = vmpackc.low %vm472_vm5, %vm470_vm4  ;;  %v366_v62 = vpop.f32.mrf.mxu0 }
 0x127   :  { %1620 = vmatprep.mubr.msk.bf16.mxu1 %vm1619_vm7, %v1786_v18  ;;  %vm473_vm12 = vcmp.gt.f32.partialorder %v366_v62, %v2101_v14 }
 0x128   :  { %v368_v63 = vpop.f32.mrf.mxu0  ;;  %1622 = vmatmul.mubr.msk.bf16.gmra.mxu1 %vm1621_vm8, %v1786_v18 }
 0x129   :  { %vm474_vm10 = vcmp.gt.f32.partialorder %v368_v63, %v2098_v13 }
 0x12a   :  { %v372_v0 = vpop.f32.mrf.mxu0 }
 0x12b   :  { %vm475_vm9 = vcmp.gt.f32.partialorder %v372_v0, %v2101_v14 }
 0x12c   :  { %v374_v1 = vpop.f32.mrf.mxu0  ;;  %vm1625_vm14 = vmpackc.low %vm475_vm9, %vm473_vm12 }
 0x12d   :  { %vm476_vm11 = vcmp.gt.f32.partialorder %v374_v1, %v2098_v13 }
 0x12e   :  { %vm1623_vm13 = vmpackc.low %vm476_vm11, %vm474_vm10  ;;  %v378_v2 = vpop.f32.mrf.mxu0 }
 0x12f   :  { %1624 = vmatprep.mubr.msk.bf16.mxu1 %vm1623_vm13, %v1786_v18  ;;  %vm477_vm2 = vcmp.gt.f32.partialorder %v378_v2, %v2101_v14 }
 0x130   :  { %v380_v4 = vpop.f32.mrf.mxu0  ;;  %1626 = vmatmul.mubr.msk.bf16.gmra.mxu1 %vm1625_vm14, %v1786_v18 }
 0x131   :  { %vm478_vm0 = vcmp.gt.f32.partialorder %v380_v4, %v2098_v13 }
 0x132   :  { %v384_v5 = vpop.f32.mrf.mxu0 }
 0x133   :  { %vm479_vm15 = vcmp.gt.f32.partialorder %v384_v5, %v2101_v14 }
 0x134   :  { %v386_v6 = vpop.f32.mrf.mxu0  ;;  %vm1629_vm4 = vmpackc.low %vm479_vm15, %vm477_vm2 }
 0x135   :  { %vm480_vm1 = vcmp.gt.f32.partialorder %v386_v6, %v2098_v13 }
 0x136   :  { %vm1627_vm3 = vmpackc.low %vm480_vm1, %vm478_vm0  ;;  %v390_v7 = vpop.f32.mrf.mxu0 }
 0x137   :  { %1628 = vmatprep.mubr.msk.bf16.mxu1 %vm1627_vm3, %v1786_v18  ;;  %vm481_vm8 = vcmp.gt.f32.partialorder %v390_v7, %v2101_v14 }
 0x138   :  { %v392_v9 = vpop.f32.mrf.mxu0  ;;  %1630 = vmatmul.mubr.msk.bf16.gmra.mxu1 %vm1629_vm4, %v1786_v18 }
 0x139   :  { %vm482_vm6 = vcmp.gt.f32.partialorder %v392_v9, %v2098_v13 }
 0x13a   :  { %v396_v11 = vpop.f32.mrf.mxu0 }
 0x13b   :  { %vm483_vm5 = vcmp.gt.f32.partialorder %v396_v11, %v2101_v14 }
 0x13c   :  { %v398_v12 = vpop.f32.mrf.mxu0  ;;  %vm1633_vm10 = vmpackc.low %vm483_vm5, %vm481_vm8 }
 0x13d   :  { %vm484_vm7 = vcmp.gt.f32.partialorder %v398_v12, %v2098_v13 }
 0x13e   :  { %vm1631_vm9 = vmpackc.low %vm484_vm7, %vm482_vm6  ;;  %v402_v15 = vpop.f32.mrf.mxu0 }
 0x13f   :  { %1632 = vmatprep.mubr.msk.bf16.mxu1 %vm1631_vm9, %v1786_v18  ;;  %vm485_vm14 = vcmp.gt.f32.partialorder %v402_v15, %v2101_v14 }
 0x140   :  { %v404_v16 = vpop.f32.mrf.mxu0  ;;  %1634 = vmatmul.mubr.msk.bf16.gmra.mxu1 %vm1633_vm10, %v1786_v18 }
 0x141   :  { %vm486_vm12 = vcmp.gt.f32.partialorder %v404_v16, %v2098_v13 }
 0x142   :  { %v408_v17 = vpop.f32.mrf.mxu0 }
 0x143   :  { %vm487_vm11 = vcmp.gt.f32.partialorder %v408_v17, %v2101_v14 }
 0x144   :  { %v410_v19 = vpop.f32.mrf.mxu0  ;;  %vm1637_vm0 = vmpackc.low %vm487_vm11, %vm485_vm14 }
 0x145   :  { %vm488_vm13 = vcmp.gt.f32.partialorder %v410_v19, %v2098_v13  ;;  %v1238_v13 = vld [vmem:[%s2542_s5] sm:$0x3] }
 0x146   :  { %vm1635_vm15 = vmpackc.low %vm488_vm13, %vm486_vm12  ;;  %v2214_v25 = vrot.slane %v1238_v13, %v2092_v10  ;;  %v2217_v26 = vrot.slane %v1238_v13, %v2090_v8 }
 0x147   :  { %1636 = vmatprep.mubr.msk.bf16.mxu1 %vm1635_vm15, %v1786_v18 }
 0x148   :  { %1638 = vmatmul.mubr.msk.bf16.gmra.mxu1 %vm1637_vm0, %v1786_v18 }
 0x190   :  { %v887_v23 = vpop.f32.mrf.mxu0 }
 0x191   :  { %v888_v14 = vadd.f32 %v887_v23, %v2203_v21 }
 0x192   :  { %v889_v24 = vpop.f32.mrf.mxu0 }
 0x193   :  { %vm1046_vm1 = vcmp.gt.f32.partialorder %v888_v14, 3.5  ;;  %v890_v18 = vadd.f32 %v889_v24, %v2206_v22 }
 0x194   :  { %v1639_v27 = vsel %vm1046_vm1, 1.0, %v1785_v3  ;;  %v891_v28 = vpop.f32.mrf.mxu0 }
 0x195   :  { %vm1047_vm2 = vcmp.gt.f32.partialorder %v890_v18, 3.5  ;;  %v892_v29 = vadd.f32 %v891_v28, %v2203_v21  ;;  %v1250_v33 = vmul.f32 %v1639_v27, %v2214_v25 }
 0x196   :  { %v1640_v30 = vsel %vm1047_vm2, 1.0, %v1785_v3  ;;  %v893_v31 = vpop.f32.mrf.mxu0 }
 0x197   :  { %vm1048_vm3 = vcmp.gt.f32.partialorder %v892_v29, 3.5  ;;  %v894_v32 = vadd.f32 %v893_v31, %v2206_v22  ;;  %v1251_v10 = vmul.f32 %v1640_v30, %v2217_v26 }
 0x198   :  { %v1641_v34 = vsel %vm1048_vm3, 1.0, %v1785_v3  ;;  %v897_v8 = vpop.f32.mrf.mxu0 }
 0x199   :  { %vm1049_vm4 = vcmp.gt.f32.partialorder %v894_v32, 3.5  ;;  %v898_v35 = vadd.f32 %v897_v8, %v2203_v21  ;;  %v1314_v36 = vadd.f32 %v1251_v10, %v1250_v33  ;;  %v1252_v39 = vmul.f32 %v1641_v34, %v2214_v25 }
 0x19a   :  { %v1642_v37 = vsel %vm1049_vm4, 1.0, %v1785_v3  ;;  %v899_v38 = vpop.f32.mrf.mxu0 }
 0x19b   :  { %v1253_v40 = vmul.f32 %v1642_v37, %v2217_v26  ;;  %vm1050_vm5 = vcmp.gt.f32.partialorder %v898_v35, 3.5  ;;  %v900_v41 = vadd.f32 %v899_v38, %v2206_v22  ;;  %1315 = vadd.xlane.f32.xlu0 %v1314_v36 }
 0x19c   :  { %v1643_v42 = vsel %vm1050_vm5, 1.0, %v1785_v3  ;;  %v901_v43 = vpop.f32.mrf.mxu0 }
 0x19d   :  { %vm1051_vm6 = vcmp.gt.f32.partialorder %v900_v41, 3.5  ;;  %v902_v44 = vadd.f32 %v901_v43, %v2203_v21  ;;  %v1317_v45 = vadd.f32 %v1253_v40, %v1252_v39  ;;  %v1254_v49 = vmul.f32 %v1643_v42, %v2214_v25 }
 0x19e   :  { %v1644_v46 = vsel %vm1051_vm6, 1.0, %v1785_v3  ;;  %v903_v47 = vpop.f32.mrf.mxu0 }
 0x19f   :  { %vm1052_vm7 = vcmp.gt.f32.partialorder %v902_v44, 3.5  ;;  %v904_v48 = vadd.f32 %v903_v47, %v2206_v22  ;;  %1318 = vadd.xlane.f32.xlu0 %v1317_v45  ;;  %v1255_v50 = vmul.f32 %v1644_v46, %v2217_v26 }
 0x1a0   :  { %v1645_v51 = vsel %vm1052_vm7, 1.0, %v1785_v3  ;;  %v907_v52 = vpop.f32.mrf.mxu0 }
 0x1a1   :  { %vm1053_vm8 = vcmp.gt.f32.partialorder %v904_v48, 3.5  ;;  %v908_v53 = vadd.f32 %v907_v52, %v2203_v21  ;;  %v1320_v54 = vadd.f32 %v1255_v50, %v1254_v49  ;;  %v1256_v57 = vmul.f32 %v1645_v51, %v2214_v25 }
 0x1a2   :  { %v1646_v55 = vsel %vm1053_vm8, 1.0, %v1785_v3  ;;  %v909_v56 = vpop.f32.mrf.mxu0 }
 0x1a3   :  { %v1257_v58 = vmul.f32 %v1646_v55, %v2217_v26  ;;  %vm1054_vm9 = vcmp.gt.f32.partialorder %v908_v53, 3.5  ;;  %v910_v59 = vadd.f32 %v909_v56, %v2206_v22  ;;  %1321 = vadd.xlane.f32.xlu1 %v1320_v54 }
 0x1a4   :  { %v1647_v60 = vsel %vm1054_vm9, 1.0, %v1785_v3  ;;  %v911_v61 = vpop.f32.mrf.mxu0 }
 0x1a5   :  { %vm1055_vm10 = vcmp.gt.f32.partialorder %v910_v59, 3.5  ;;  %v912_v62 = vadd.f32 %v911_v61, %v2203_v21  ;;  %v1323_v63 = vadd.f32 %v1257_v58, %v1256_v57  ;;  %v1258_v2 = vmul.f32 %v1647_v60, %v2214_v25 }
 0x1a6   :  { %v1648_v0 = vsel %vm1055_vm10, 1.0, %v1785_v3  ;;  %v913_v1 = vpop.f32.mrf.mxu0 }
 0x1a7   :  { %v1259_v4 = vmul.f32 %v1648_v0, %v2217_v26  ;;  %vm1056_vm11 = vcmp.gt.f32.partialorder %v912_v62, 3.5  ;;  %v914_v5 = vadd.f32 %v913_v1, %v2206_v22  ;;  %1324 = vadd.xlane.f32.xlu1 %v1323_v63 }
 0x1a8   :  { %v1649_v6 = vsel %vm1056_vm11, 1.0, %v1785_v3  ;;  %v917_v7 = vpop.f32.mrf.mxu1 }
 0x1a9   :  { %vm1057_vm12 = vcmp.gt.f32.partialorder %v914_v5, 3.5  ;;  %v918_v9 = vadd.f32 %v917_v7, %v2203_v21  ;;  %v1326_v11 = vadd.f32 %v1259_v4, %v1258_v2  ;;  %v1260_v16 = vmul.f32 %v1649_v6, %v2214_v25 }
 0x1aa   :  { %v1650_v12 = vsel %vm1057_vm12, 1.0, %v1785_v3  ;;  %v919_v15 = vpop.f32.mrf.mxu1 }
 0x1ab   :  { %v1261_v17 = vmul.f32 %v1650_v12, %v2217_v26  ;;  %vm1058_vm13 = vcmp.gt.f32.partialorder %v918_v9, 3.5  ;;  %v920_v19 = vadd.f32 %v919_v15, %v2206_v22  ;;  %1327 = vadd.xlane.f32.xlu0 %v1326_v11 }
 0x1ac   :  { %v1651_v20 = vsel %vm1058_vm13, 1.0, %v1785_v3  ;;  %v921_v23 = vpop.f32.mrf.mxu1 }
 0x1ad   :  { %vm1059_vm14 = vcmp.gt.f32.partialorder %v920_v19, 3.5  ;;  %v922_v13 = vadd.f32 %v921_v23, %v2203_v21  ;;  %v1329_v14 = vadd.f32 %v1261_v17, %v1260_v16  ;;  %v1262_v27 = vmul.f32 %v1651_v20, %v2214_v25 }
 0x1ae   :  { %v1652_v24 = vsel %vm1059_vm14, 1.0, %v1785_v3  ;;  %v923_v18 = vpop.f32.mrf.mxu1 }
 0x1af   :  { %v1263_v28 = vmul.f32 %v1652_v24, %v2217_v26  ;;  %vm1060_vm15 = vcmp.gt.f32.partialorder %v922_v13, 3.5  ;;  %v924_v29 = vadd.f32 %v923_v18, %v2206_v22  ;;  %1330 = vadd.xlane.f32.xlu1 %v1329_v14 }
 0x1b0   :  { %v1653_v30 = vsel %vm1060_vm15, 1.0, %v1785_v3  ;;  %v927_v31 = vpop.f32.mrf.mxu1 }
 0x1b1   :  { %vm1061_vm0 = vcmp.gt.f32.partialorder %v924_v29, 3.5  ;;  %v928_v32 = vadd.f32 %v927_v31, %v2203_v21  ;;  %v1332_v33 = vadd.f32 %v1263_v28, %v1262_v27  ;;  %v1264_v8 = vmul.f32 %v1653_v30, %v2214_v25 }
 0x1b2   :  { %v1654_v10 = vsel %vm1061_vm0, 1.0, %v1785_v3  ;;  %v929_v34 = vpop.f32.mrf.mxu1 }
 0x1b3   :  { %v1265_v35 = vmul.f32 %v1654_v10, %v2217_v26  ;;  %vm1062_vm1 = vcmp.gt.f32.partialorder %v928_v32, 3.5  ;;  %v930_v36 = vadd.f32 %v929_v34, %v2206_v22  ;;  %1333 = vadd.xlane.f32.xlu0 %v1332_v33 }
 0x1b4   :  { %v1655_v37 = vsel %vm1062_vm1, 1.0, %v1785_v3  ;;  %v931_v38 = vpop.f32.mrf.mxu1 }
 0x1b5   :  { %vm1063_vm2 = vcmp.gt.f32.partialorder %v930_v36, 3.5  ;;  %v932_v39 = vadd.f32 %v931_v38, %v2203_v21  ;;  %v1335_v40 = vadd.f32 %v1265_v35, %v1264_v8  ;;  %v1266_v43 = vmul.f32 %v1655_v37, %v2214_v25 }
 0x1b6   :  { %v1656_v41 = vsel %vm1063_vm2, 1.0, %v1785_v3  ;;  %v933_v42 = vpop.f32.mrf.mxu1 }
 0x1b7   :  { %v1267_v44 = vmul.f32 %v1656_v41, %v2217_v26  ;;  %vm1064_vm3 = vcmp.gt.f32.partialorder %v932_v39, 3.5  ;;  %v934_v45 = vadd.f32 %v933_v42, %v2206_v22  ;;  %1336 = vadd.xlane.f32.xlu1 %v1335_v40 }
 0x1b8   :  { %v1657_v46 = vsel %vm1064_vm3, 1.0, %v1785_v3  ;;  %v937_v47 = vpop.f32.mrf.mxu1 }
 0x1b9   :  { %vm1065_vm4 = vcmp.gt.f32.partialorder %v934_v45, 3.5  ;;  %v938_v48 = vadd.f32 %v937_v47, %v2203_v21  ;;  %v1338_v49 = vadd.f32 %v1267_v44, %v1266_v43  ;;  %v1268_v52 = vmul.f32 %v1657_v46, %v2214_v25 }
 0x1ba   :  { %v1658_v50 = vsel %vm1065_vm4, 1.0, %v1785_v3  ;;  %v939_v51 = vpop.f32.mrf.mxu1 }
 0x1bb   :  { %v1269_v53 = vmul.f32 %v1658_v50, %v2217_v26  ;;  %vm1066_vm5 = vcmp.gt.f32.partialorder %v938_v48, 3.5  ;;  %v940_v54 = vadd.f32 %v939_v51, %v2206_v22  ;;  %1339 = vadd.xlane.f32.xlu0 %v1338_v49 }
 0x1bc   :  { %v1659_v55 = vsel %vm1066_vm5, 1.0, %v1785_v3  ;;  %v941_v56 = vpop.f32.mrf.mxu1 }
 0x1bd   :  { %vm1067_vm6 = vcmp.gt.f32.partialorder %v940_v54, 3.5  ;;  %v942_v57 = vadd.f32 %v941_v56, %v2203_v21  ;;  %v1341_v58 = vadd.f32 %v1269_v53, %v1268_v52  ;;  %v1270_v61 = vmul.f32 %v1659_v55, %v2214_v25 }
 0x1be   :  { %v1660_v59 = vsel %vm1067_vm6, 1.0, %v1785_v3  ;;  %v943_v60 = vpop.f32.mrf.mxu1 }
 0x1bf   :  { %v1271_v62 = vmul.f32 %v1660_v59, %v2217_v26  ;;  %vm1068_vm7 = vcmp.gt.f32.partialorder %v942_v57, 3.5  ;;  %v944_v63 = vadd.f32 %v943_v60, %v2206_v22  ;;  %1342 = vadd.xlane.f32.xlu1 %v1341_v58 }
 0x1c0   :  { %v1661_v0 = vsel %vm1068_vm7, 1.0, %v1785_v3  ;;  %v947_v1 = vpop.f32.mrf.mxu1 }
 0x1c1   :  { %vm1069_vm8 = vcmp.gt.f32.partialorder %v944_v63, 3.5  ;;  %v948_v2 = vadd.f32 %v947_v1, %v2203_v21  ;;  %v1344_v4 = vadd.f32 %v1271_v62, %v1270_v61  ;;  %v1272_v7 = vmul.f32 %v1661_v0, %v2214_v25 }
 0x1c2   :  { %v1662_v5 = vsel %vm1069_vm8, 1.0, %v1785_v3  ;;  %v949_v6 = vpop.f32.mrf.mxu1 }
 0x1c3   :  { %v1273_v9 = vmul.f32 %v1662_v5, %v2217_v26  ;;  %vm1070_vm9 = vcmp.gt.f32.partialorder %v948_v2, 3.5  ;;  %v950_v11 = vadd.f32 %v949_v6, %v2206_v22  ;;  %1345 = vadd.xlane.f32.xlu0 %v1344_v4 }
 0x1c4   :  { %v1663_v12 = vsel %vm1070_vm9, 1.0, %v1785_v3  ;;  %v951_v15 = vpop.f32.mrf.mxu1 }
 0x1c5   :  { %vm1071_vm10 = vcmp.gt.f32.partialorder %v950_v11, 3.5  ;;  %v952_v16 = vadd.f32 %v951_v15, %v2203_v21  ;;  %v1347_v17 = vadd.f32 %v1273_v9, %v1272_v7  ;;  %v1274_v23 = vmul.f32 %v1663_v12, %v2214_v25 }
 0x1c6   :  { %v1664_v19 = vsel %vm1071_vm10, 1.0, %v1785_v3  ;;  %v953_v20 = vpop.f32.mrf.mxu1 }
 0x1c7   :  { %v1275_v13 = vmul.f32 %v1664_v19, %v2217_v26  ;;  %vm1072_vm11 = vcmp.gt.f32.partialorder %v952_v16, 3.5  ;;  %v954_v14 = vadd.f32 %v953_v20, %v2206_v22  ;;  %1348 = vadd.xlane.f32.xlu1 %v1347_v17 }
 0x1c8   :  { %v1665_v24 = vsel %vm1072_vm11, 1.0, %v1785_v3  ;;  %v957_v18 = vpop.f32.mrf.mxu1 }
 0x1c9   :  { %vm1073_vm12 = vcmp.gt.f32.partialorder %v954_v14, 3.5  ;;  %v958_v27 = vadd.f32 %v957_v18, %v2203_v21  ;;  %v1350_v28 = vadd.f32 %v1275_v13, %v1274_v23  ;;  %v1276_v31 = vmul.f32 %v1665_v24, %v2214_v25 }
 0x1ca   :  { %v1666_v29 = vsel %vm1073_vm12, 1.0, %v1785_v3  ;;  %v959_v30 = vpop.f32.mrf.mxu1 }
 0x1cb   :  { %v1277_v32 = vmul.f32 %v1666_v29, %v2217_v26  ;;  %vm1074_vm13 = vcmp.gt.f32.partialorder %v958_v27, 3.5  ;;  %v960_v33 = vadd.f32 %v959_v30, %v2206_v22  ;;  %1351 = vadd.xlane.f32.xlu0 %v1350_v28 }
 0x1cc   :  { %v1667_v10 = vsel %vm1074_vm13, 1.0, %v1785_v3  ;;  %v961_v34 = vpop.f32.mrf.mxu1 }
 0x1cd   :  { %vm1075_vm14 = vcmp.gt.f32.partialorder %v960_v33, 3.5  ;;  %v962_v8 = vadd.f32 %v961_v34, %v2203_v21  ;;  %v1353_v35 = vadd.f32 %v1277_v32, %v1276_v31  ;;  %v1278_v38 = vmul.f32 %v1667_v10, %v2214_v25 }
 0x1ce   :  { %v1668_v36 = vsel %vm1075_vm14, 1.0, %v1785_v3  ;;  %v963_v37 = vpop.f32.mrf.mxu1 }
 0x1cf   :  { %v1279_v39 = vmul.f32 %v1668_v36, %v2217_v26  ;;  %vm1076_vm15 = vcmp.gt.f32.partialorder %v962_v8, 3.5  ;;  %v964_v40 = vadd.f32 %v963_v37, %v2206_v22  ;;  %1354 = vadd.xlane.f32.xlu1 %v1353_v35 }
 0x1d0   :  { %v1669_v41 = vsel %vm1076_vm15, 1.0, %v1785_v3  ;;  %v967_v42 = vpop.f32.mrf.mxu1 }
 0x1d1   :  { %vm1077_vm0 = vcmp.gt.f32.partialorder %v964_v40, 3.5  ;;  %v968_v43 = vadd.f32 %v967_v42, %v2203_v21  ;;  %v1356_v44 = vadd.f32 %v1279_v39, %v1278_v38  ;;  %v1280_v47 = vmul.f32 %v1669_v41, %v2214_v25 }
 0x1d2   :  { %v1670_v45 = vsel %vm1077_vm0, 1.0, %v1785_v3  ;;  %v969_v46 = vpop.f32.mrf.mxu1 }
 0x1d3   :  { %v1281_v48 = vmul.f32 %v1670_v45, %v2217_v26  ;;  %vm1078_vm1 = vcmp.gt.f32.partialorder %v968_v43, 3.5  ;;  %v970_v49 = vadd.f32 %v969_v46, %v2206_v22  ;;  %1357 = vadd.xlane.f32.xlu0 %v1356_v44 }
 0x1d4   :  { %v1671_v50 = vsel %vm1078_vm1, 1.0, %v1785_v3  ;;  %v971_v51 = vpop.f32.mrf.mxu1 }
 0x1d5   :  { %vm1079_vm2 = vcmp.gt.f32.partialorder %v970_v49, 3.5  ;;  %v972_v52 = vadd.f32 %v971_v51, %v2203_v21  ;;  %v1359_v53 = vadd.f32 %v1281_v48, %v1280_v47  ;;  %v1282_v56 = vmul.f32 %v1671_v50, %v2214_v25 }
 0x1d6   :  { %v1672_v54 = vsel %vm1079_vm2, 1.0, %v1785_v3  ;;  %v973_v55 = vpop.f32.mrf.mxu1 }
 0x1d7   :  { %v1283_v57 = vmul.f32 %v1672_v54, %v2217_v26  ;;  %vm1080_vm3 = vcmp.gt.f32.partialorder %v972_v52, 3.5  ;;  %v974_v58 = vadd.f32 %v973_v55, %v2206_v22  ;;  %1360 = vadd.xlane.f32.xlu1 %v1359_v53 }
 0x1d8   :  { %v1673_v59 = vsel %vm1080_vm3, 1.0, %v1785_v3  ;;  %v977_v60 = vpop.f32.mrf.mxu1 }
 0x1d9   :  { %vm1081_vm4 = vcmp.gt.f32.partialorder %v974_v58, 3.5  ;;  %v978_v61 = vadd.f32 %v977_v60, %v2203_v21  ;;  %v1362_v62 = vadd.f32 %v1283_v57, %v1282_v56  ;;  %v1284_v1 = vmul.f32 %v1673_v59, %v2214_v25 }
 0x1da   :  { %v1674_v63 = vsel %vm1081_vm4, 1.0, %v1785_v3  ;;  %v979_v0 = vpop.f32.mrf.mxu1 }
 0x1db   :  { %v1285_v2 = vmul.f32 %v1674_v63, %v2217_v26  ;;  %vm1082_vm5 = vcmp.gt.f32.partialorder %v978_v61, 3.5  ;;  %v980_v4 = vadd.f32 %v979_v0, %v2206_v22  ;;  %1363 = vadd.xlane.f32.xlu0 %v1362_v62 }
 0x1dc   :  { %v1675_v5 = vsel %vm1082_vm5, 1.0, %v1785_v3  ;;  %v981_v6 = vpop.f32.mrf.mxu1 }
 0x1dd   :  { %vm1083_vm6 = vcmp.gt.f32.partialorder %v980_v4, 3.5  ;;  %v982_v7 = vadd.f32 %v981_v6, %v2203_v21  ;;  %v1365_v9 = vadd.f32 %v1285_v2, %v1284_v1  ;;  %v1286_v15 = vmul.f32 %v1675_v5, %v2214_v25 }
 0x1de   :  { %v1676_v11 = vsel %vm1083_vm6, 1.0, %v1785_v3  ;;  %v983_v12 = vpop.f32.mrf.mxu1 }
 0x1df   :  { %v1287_v16 = vmul.f32 %v1676_v11, %v2217_v26  ;;  %vm1084_vm7 = vcmp.gt.f32.partialorder %v982_v7, 3.5  ;;  %v984_v17 = vadd.f32 %v983_v12, %v2206_v22  ;;  %1366 = vadd.xlane.f32.xlu1 %v1365_v9 }
 0x1e0   :  { %v1677_v19 = vsel %vm1084_vm7, 1.0, %v1785_v3  ;;  %v987_v20 = vpop.f32.mrf.mxu1 }
 0x1e1   :  { %vm1085_vm8 = vcmp.gt.f32.partialorder %v984_v17, 3.5  ;;  %v988_v23 = vadd.f32 %v987_v20, %v2203_v21  ;;  %v1368_v13 = vadd.f32 %v1287_v16, %v1286_v15  ;;  %v1288_v18 = vmul.f32 %v1677_v19, %v2214_v25 }
 0x1e2   :  { %v1678_v14 = vsel %vm1085_vm8, 1.0, %v1785_v3  ;;  %v989_v24 = vpop.f32.mrf.mxu1 }
 0x1e3   :  { %v1289_v27 = vmul.f32 %v1678_v14, %v2217_v26  ;;  %vm1086_vm9 = vcmp.gt.f32.partialorder %v988_v23, 3.5  ;;  %v990_v28 = vadd.f32 %v989_v24, %v2206_v22  ;;  %1369 = vadd.xlane.f32.xlu0 %v1368_v13 }
 0x1e4   :  { %v1679_v29 = vsel %vm1086_vm9, 1.0, %v1785_v3  ;;  %v991_v30 = vpop.f32.mrf.mxu1 }
 0x1e5   :  { %vm1087_vm10 = vcmp.gt.f32.partialorder %v990_v28, 3.5  ;;  %v992_v31 = vadd.f32 %v991_v30, %v2203_v21  ;;  %v1371_v32 = vadd.f32 %v1289_v27, %v1288_v18  ;;  %v1290_v34 = vmul.f32 %v1679_v29, %v2214_v25 }
 0x1e6   :  { %v1680_v33 = vsel %vm1087_vm10, 1.0, %v1785_v3  ;;  %v993_v10 = vpop.f32.mrf.mxu1 }
 0x1e7   :  { %v1291_v8 = vmul.f32 %v1680_v33, %v2217_v26  ;;  %vm1088_vm11 = vcmp.gt.f32.partialorder %v992_v31, 3.5  ;;  %v994_v35 = vadd.f32 %v993_v10, %v2206_v22  ;;  %1372 = vadd.xlane.f32.xlu1 %v1371_v32 }
 0x1e8   :  { %v1681_v36 = vsel %vm1088_vm11, 1.0, %v1785_v3  ;;  %v997_v37 = vpop.f32.mrf.mxu1 }
 0x1e9   :  { %vm1089_vm12 = vcmp.gt.f32.partialorder %v994_v35, 3.5  ;;  %v998_v38 = vadd.f32 %v997_v37, %v2203_v21  ;;  %v1374_v39 = vadd.f32 %v1291_v8, %v1290_v34  ;;  %v1292_v42 = vmul.f32 %v1681_v36, %v2214_v25 }
 0x1ea   :  { %v1682_v40 = vsel %vm1089_vm12, 1.0, %v1785_v3  ;;  %v999_v41 = vpop.f32.mrf.mxu1 }
 0x1eb   :  { %v1293_v43 = vmul.f32 %v1682_v40, %v2217_v26  ;;  %vm1090_vm13 = vcmp.gt.f32.partialorder %v998_v38, 3.5  ;;  %v1000_v44 = vadd.f32 %v999_v41, %v2206_v22  ;;  %1375 = vadd.xlane.f32.xlu0 %v1374_v39 }
 0x1ec   :  { %v1683_v45 = vsel %vm1090_vm13, 1.0, %v1785_v3  ;;  %v1001_v46 = vpop.f32.mrf.mxu1 }
 0x1ed   :  { %vm1091_vm14 = vcmp.gt.f32.partialorder %v1000_v44, 3.5  ;;  %v1002_v47 = vadd.f32 %v1001_v46, %v2203_v21  ;;  %v1377_v48 = vadd.f32 %v1293_v43, %v1292_v42  ;;  %v1294_v51 = vmul.f32 %v1683_v45, %v2214_v25 }
 0x1ee   :  { %v1684_v49 = vsel %vm1091_vm14, 1.0, %v1785_v3  ;;  %v1003_v50 = vpop.f32.mrf.mxu1 }
 0x1ef   :  { %v1295_v52 = vmul.f32 %v1684_v49, %v2217_v26  ;;  %vm1092_vm15 = vcmp.gt.f32.partialorder %v1002_v47, 3.5  ;;  %v1004_v53 = vadd.f32 %v1003_v50, %v2206_v22  ;;  %1378 = vadd.xlane.f32.xlu1 %v1377_v48 }
 0x1f0   :  { %v1685_v54 = vsel %vm1092_vm15, 1.0, %v1785_v3  ;;  %v1007_v55 = vpop.f32.mrf.mxu1 }
 0x1f1   :  { %vm1093_vm0 = vcmp.gt.f32.partialorder %v1004_v53, 3.5  ;;  %v1008_v56 = vadd.f32 %v1007_v55, %v2203_v21  ;;  %v1380_v57 = vadd.f32 %v1295_v52, %v1294_v51  ;;  %v1296_v60 = vmul.f32 %v1685_v54, %v2214_v25 }
 0x1f2   :  { %v1686_v58 = vsel %vm1093_vm0, 1.0, %v1785_v3  ;;  %v1009_v59 = vpop.f32.mrf.mxu1 }
 0x1f3   :  { %v1297_v61 = vmul.f32 %v1686_v58, %v2217_v26  ;;  %vm1094_vm1 = vcmp.gt.f32.partialorder %v1008_v56, 3.5  ;;  %v1010_v62 = vadd.f32 %v1009_v59, %v2206_v22  ;;  %1381 = vadd.xlane.f32.xlu0 %v1380_v57 }
 0x1f4   :  { %v1687_v63 = vsel %vm1094_vm1, 1.0, %v1785_v3  ;;  %v1011_v0 = vpop.f32.mrf.mxu1  ;;  %vm1410_vm1 = vcmask 7168  }
 0x1f5   :  { %vm1095_vm2 = vcmp.gt.f32.partialorder %v1010_v62, 3.5  ;;  %v1012_v1 = vadd.f32 %v1011_v0, %v2203_v21  ;;  %v1383_v2 = vadd.f32 %v1297_v61, %v1296_v60  ;;  %v1298_v6 = vmul.f32 %v1687_v63, %v2214_v25 }
 0x1f6   :  { %v1688_v4 = vsel %vm1095_vm2, 1.0, %v1785_v3  ;;  %v1013_v5 = vpop.f32.mrf.mxu1 }
 0x1f7   :  { %v1299_v7 = vmul.f32 %v1688_v4, %v2217_v26  ;;  %vm1096_vm3 = vcmp.gt.f32.partialorder %v1012_v1, 3.5  ;;  %v1014_v9 = vadd.f32 %v1013_v5, %v2206_v22  ;;  %1384 = vadd.xlane.f32.xlu1 %v1383_v2 }
 0x1f8   :  { %v1689_v11 = vsel %vm1096_vm3, 1.0, %v1785_v3  ;;  %v1017_v12 = vpop.f32.mrf.mxu1 }
 0x1f9   :  { %vm1097_vm4 = vcmp.gt.f32.partialorder %v1014_v9, 3.5  ;;  %v1018_v15 = vadd.f32 %v1017_v12, %v2203_v21  ;;  %v1386_v16 = vadd.f32 %v1299_v7, %v1298_v6  ;;  %v1300_v20 = vmul.f32 %v1689_v11, %v2214_v25 }
 0x1fa   :  { %v1690_v17 = vsel %vm1097_vm4, 1.0, %v1785_v3  ;;  %v1019_v19 = vpop.f32.mrf.mxu1 }
 0x1fb   :  { %v1301_v23 = vmul.f32 %v1690_v17, %v2217_v26  ;;  %vm1098_vm5 = vcmp.gt.f32.partialorder %v1018_v15, 3.5  ;;  %v1020_v13 = vadd.f32 %v1019_v19, %v2206_v22  ;;  %1387 = vadd.xlane.f32.xlu0 %v1386_v16 }
 0x1fc   :  { %v1691_v14 = vsel %vm1098_vm5, 1.0, %v1785_v3  ;;  %v1021_v24 = vpop.f32.mrf.mxu1 }
 0x1fd   :  { %vm1099_vm6 = vcmp.gt.f32.partialorder %v1020_v13, 3.5  ;;  %v1022_v18 = vadd.f32 %v1021_v24, %v2203_v21  ;;  %v1389_v27 = vadd.f32 %v1301_v23, %v1300_v20  ;;  %v1302_v30 = vmul.f32 %v1691_v14, %v2214_v25 }
 0x1fe   :  { %v1692_v28 = vsel %vm1099_vm6, 1.0, %v1785_v3  ;;  %v1023_v29 = vpop.f32.mrf.mxu1 }
 0x1ff   :  { %v1303_v31 = vmul.f32 %v1692_v28, %v2217_v26  ;;  %vm1100_vm7 = vcmp.gt.f32.partialorder %v1022_v18, 3.5  ;;  %v1024_v32 = vadd.f32 %v1023_v29, %v2206_v22  ;;  %1390 = vadd.xlane.f32.xlu1 %v1389_v27 }
 0x200   :  { %v1693_v33 = vsel %vm1100_vm7, 1.0, %v1785_v3  ;;  %v1027_v10 = vpop.f32.mrf.mxu1 }
 0x201   :  { %vm1101_vm8 = vcmp.gt.f32.partialorder %v1024_v32, 3.5  ;;  %v1028_v34 = vadd.f32 %v1027_v10, %v2203_v21  ;;  %v1392_v8 = vadd.f32 %v1303_v31, %v1302_v30  ;;  %v1304_v37 = vmul.f32 %v1693_v33, %v2214_v25 }
 0x202   :  { %v1694_v35 = vsel %vm1101_vm8, 1.0, %v1785_v3  ;;  %v1029_v36 = vpop.f32.mrf.mxu1 }
 0x203   :  { %v1305_v38 = vmul.f32 %v1694_v35, %v2217_v26  ;;  %vm1102_vm9 = vcmp.gt.f32.partialorder %v1028_v34, 3.5  ;;  %v1030_v39 = vadd.f32 %v1029_v36, %v2206_v22  ;;  %1393 = vadd.xlane.f32.xlu0 %v1392_v8 }
 0x204   :  { %v1695_v40 = vsel %vm1102_vm9, 1.0, %v1785_v3  ;;  %v1031_v41 = vpop.f32.mrf.mxu1 }
 0x205   :  { %vm1103_vm10 = vcmp.gt.f32.partialorder %v1030_v39, 3.5  ;;  %v1032_v42 = vadd.f32 %v1031_v41, %v2203_v21  ;;  %v1395_v43 = vadd.f32 %v1305_v38, %v1304_v37  ;;  %v1306_v46 = vmul.f32 %v1695_v40, %v2214_v25 }
 0x206   :  { %v1696_v44 = vsel %vm1103_vm10, 1.0, %v1785_v3  ;;  %v1033_v45 = vpop.f32.mrf.mxu1 }
 0x207   :  { %v1307_v47 = vmul.f32 %v1696_v44, %v2217_v26  ;;  %vm1104_vm11 = vcmp.gt.f32.partialorder %v1032_v42, 3.5  ;;  %v1034_v48 = vadd.f32 %v1033_v45, %v2206_v22  ;;  %1396 = vadd.xlane.f32.xlu1 %v1395_v43 }
 0x208   :  { %v1697_v49 = vsel %vm1104_vm11, 1.0, %v1785_v3  ;;  %v1037_v50 = vpop.f32.mrf.mxu1 }
 0x209   :  { %vm1105_vm12 = vcmp.gt.f32.partialorder %v1034_v48, 3.5  ;;  %v1038_v51 = vadd.f32 %v1037_v50, %v2203_v21  ;;  %v1398_v52 = vadd.f32 %v1307_v47, %v1306_v46  ;;  %v1308_v55 = vmul.f32 %v1697_v49, %v2214_v25 }
 0x20a   :  { %v1698_v53 = vsel %vm1105_vm12, 1.0, %v1785_v3  ;;  %v1039_v54 = vpop.f32.mrf.mxu1 }
 0x20b   :  { %v1309_v56 = vmul.f32 %v1698_v53, %v2217_v26  ;;  %vm1106_vm13 = vcmp.gt.f32.partialorder %v1038_v51, 3.5  ;;  %v1040_v57 = vadd.f32 %v1039_v54, %v2206_v22  ;;  %1399 = vadd.xlane.f32.xlu0 %v1398_v52 }
 0x20c   :  { %v1699_v58 = vsel %vm1106_vm13, 1.0, %v1785_v3  ;;  %v1041_v59 = vpop.f32.mrf.mxu1 }
 0x20d   :  { %vm1107_vm14 = vcmp.gt.f32.partialorder %v1040_v57, 3.5  ;;  %v1042_v60 = vadd.f32 %v1041_v59, %v2203_v21  ;;  %v1401_v61 = vadd.f32 %v1309_v56, %v1308_v55  ;;  %v1310_v0 = vmul.f32 %v1699_v58, %v2214_v25 }
 0x20e   :  { %v1700_v62 = vsel %vm1107_vm14, 1.0, %v1785_v3  ;;  %v1043_v63 = vpop.f32.mrf.mxu1 }
 0x20f   :  { %v1311_v1 = vmul.f32 %v1700_v62, %v2217_v26  ;;  %vm1108_vm15 = vcmp.gt.f32.partialorder %v1042_v60, 3.5  ;;  %v1044_v2 = vadd.f32 %v1043_v63, %v2206_v22  ;;  %1402 = vadd.xlane.f32.xlu1 %v1401_v61 }
 0x210   :  { %v1701_v4 = vsel %vm1108_vm15, 1.0, %v1785_v3 }
 0x211   :  { %vm1109_vm0 = vcmp.gt.f32.partialorder %v1044_v2, 3.5  ;;  %v1404_v5 = vadd.f32 %v1311_v1, %v1310_v0  ;;  %v1312_v21 = vmul.f32 %v1701_v4, %v2214_v25 }
 0x212   :  { %v1702_v6 = vsel %vm1109_vm0, 1.0, %v1785_v3 }
 0x213   :  { %v1313_v7 = vmul.f32 %v1702_v6, %v2217_v26  ;;  %1405 = vadd.xlane.f32.xlu0 %v1404_v5 }
 0x215   :  { %v1407_v9 = vadd.f32 %v1313_v7, %v1312_v21 }
 0x217   :  { %1408 = vadd.xlane.f32.xlu1 %v1407_v9 }
 0x224   :  { %v1316_v11 = vpop.xlane.xlu0 %1315 }
 0x225   :  { %1411 = vst.msk [vmem:[%s2543_s6] sm:$0xff] %vm1410_vm1, %v1316_v11 }
 0x228   :  { %v1319_v22 = vpop.xlane.xlu0 %1318 }
 0x229   :  { %1412 = vst.msk [vmem:[%s2543_s6 + $0x8] sm:$0xff] %vm1410_vm1, %v1319_v22 }
 0x22c   :  { %v1322_v3 = vpop.xlane.xlu1 %1321 }
 0x22d   :  { %1413 = vst.msk [vmem:[%s2543_s6 + $0x10] sm:$0xff] %vm1410_vm1, %v1322_v3 }
 0x230   :  { %v1325_v25 = vpop.xlane.xlu1 %1324 }
 0x231   :  { %1414 = vst.msk [vmem:[%s2543_s6 + $0x18] sm:$0xff] %vm1410_vm1, %v1325_v25 }
 0x234   :  { %v1328_v26 = vpop.xlane.xlu0 %1327 }
 0x235   :  { %1415 = vst.msk [vmem:[%s2543_s6 + $0x20] sm:$0xff] %vm1410_vm1, %v1328_v26 }
 0x238   :  { %v1331_v12 = vpop.xlane.xlu1 %1330 }
 0x239   :  { %1416 = vst.msk [vmem:[%s2543_s6 + $0x28] sm:$0xff] %vm1410_vm1, %v1331_v12 }
 0x23c   :  { %v1334_v15 = vpop.xlane.xlu0 %1333 }
 0x23d   :  { %1417 = vst.msk [vmem:[%s2543_s6 + $0x30] sm:$0xff] %vm1410_vm1, %v1334_v15 }
 0x240   :  { %v1337_v16 = vpop.xlane.xlu1 %1336 }
 0x241   :  { %1418 = vst.msk [vmem:[%s2543_s6 + $0x38] sm:$0xff] %vm1410_vm1, %v1337_v16 }
 0x244   :  { %v1340_v17 = vpop.xlane.xlu0 %1339 }
 0x245   :  { %1419 = vst.msk [vmem:[%s2543_s6 + $0x40] sm:$0xff] %vm1410_vm1, %v1340_v17 }
 0x248   :  { %v1343_v19 = vpop.xlane.xlu1 %1342 }
 0x249   :  { %1420 = vst.msk [vmem:[%s2543_s6 + $0x48] sm:$0xff] %vm1410_vm1, %v1343_v19 }
 0x24c   :  { %v1346_v20 = vpop.xlane.xlu0 %1345 }
 0x24d   :  { %1421 = vst.msk [vmem:[%s2543_s6 + $0x50] sm:$0xff] %vm1410_vm1, %v1346_v20 }
 0x250   :  { %v1349_v23 = vpop.xlane.xlu1 %1348 }
 0x251   :  { %1422 = vst.msk [vmem:[%s2543_s6 + $0x58] sm:$0xff] %vm1410_vm1, %v1349_v23 }
 0x254   :  { %v1352_v13 = vpop.xlane.xlu0 %1351 }
 0x255   :  { %1423 = vst.msk [vmem:[%s2543_s6 + $0x60] sm:$0xff] %vm1410_vm1, %v1352_v13 }
 0x258   :  { %v1355_v14 = vpop.xlane.xlu1 %1354 }
 0x259   :  { %1424 = vst.msk [vmem:[%s2543_s6 + $0x68] sm:$0xff] %vm1410_vm1, %v1355_v14 }
 0x25c   :  { %v1358_v24 = vpop.xlane.xlu0 %1357 }
 0x25d   :  { %1425 = vst.msk [vmem:[%s2543_s6 + $0x70] sm:$0xff] %vm1410_vm1, %v1358_v24 }
 0x260   :  { %v1361_v18 = vpop.xlane.xlu1 %1360 }
 0x261   :  { %1426 = vst.msk [vmem:[%s2543_s6 + $0x78] sm:$0xff] %vm1410_vm1, %v1361_v18 }
 0x264   :  { %v1364_v27 = vpop.xlane.xlu0 %1363 }
 0x265   :  { %1427 = vst.msk [vmem:[%s2543_s6 + $0x80] sm:$0xff] %vm1410_vm1, %v1364_v27 }
 0x268   :  { %v1367_v28 = vpop.xlane.xlu1 %1366 }
 0x269   :  { %1428 = vst.msk [vmem:[%s2543_s6 + $0x88] sm:$0xff] %vm1410_vm1, %v1367_v28 }
 0x26c   :  { %v1370_v29 = vpop.xlane.xlu0 %1369 }
 0x26d   :  { %1429 = vst.msk [vmem:[%s2543_s6 + $0x90] sm:$0xff] %vm1410_vm1, %v1370_v29 }
 0x270   :  { %v1373_v30 = vpop.xlane.xlu1 %1372 }
 0x271   :  { %1430 = vst.msk [vmem:[%s2543_s6 + $0x98] sm:$0xff] %vm1410_vm1, %v1373_v30 }
 0x274   :  { %v1376_v31 = vpop.xlane.xlu0 %1375 }
 0x275   :  { %1431 = vst.msk [vmem:[%s2543_s6 + $0xa0] sm:$0xff] %vm1410_vm1, %v1376_v31 }
 0x278   :  { %v1379_v32 = vpop.xlane.xlu1 %1378 }
 0x279   :  { %1432 = vst.msk [vmem:[%s2543_s6 + $0xa8] sm:$0xff] %vm1410_vm1, %v1379_v32 }
 0x27c   :  { %v1382_v33 = vpop.xlane.xlu0 %1381 }
 0x27d   :  { %1433 = vst.msk [vmem:[%s2543_s6 + $0xb0] sm:$0xff] %vm1410_vm1, %v1382_v33 }
 0x280   :  { %v1385_v10 = vpop.xlane.xlu1 %1384 }
 0x281   :  { %1434 = vst.msk [vmem:[%s2543_s6 + $0xb8] sm:$0xff] %vm1410_vm1, %v1385_v10 }
 0x284   :  { %v1388_v34 = vpop.xlane.xlu0 %1387 }
 0x285   :  { %1435 = vst.msk [vmem:[%s2543_s6 + $0xc0] sm:$0xff] %vm1410_vm1, %v1388_v34 }
 0x288   :  { %v1391_v8 = vpop.xlane.xlu1 %1390 }
 0x289   :  { %1436 = vst.msk [vmem:[%s2543_s6 + $0xc8] sm:$0xff] %vm1410_vm1, %v1391_v8 }
 0x28c   :  { %v1394_v35 = vpop.xlane.xlu0 %1393 }
 0x28d   :  { %1437 = vst.msk [vmem:[%s2543_s6 + $0xd0] sm:$0xff] %vm1410_vm1, %v1394_v35 }
 0x290   :  { %v1397_v36 = vpop.xlane.xlu1 %1396 }
 0x291   :  { %1438 = vst.msk [vmem:[%s2543_s6 + $0xd8] sm:$0xff] %vm1410_vm1, %v1397_v36 }
 0x294   :  { %v1400_v37 = vpop.xlane.xlu0 %1399 }
 0x295   :  { %1439 = vst.msk [vmem:[%s2543_s6 + $0xe0] sm:$0xff] %vm1410_vm1, %v1400_v37 }
 0x298   :  { %v1403_v38 = vpop.xlane.xlu1 %1402 }
 0x299   :  { %1440 = vst.msk [vmem:[%s2543_s6 + $0xe8] sm:$0xff] %vm1410_vm1, %v1403_v38 }
 0x29c   :  { %v1406_v39 = vpop.xlane.xlu0 %1405 }
 0x29d   :  { %1441 = vst.msk [vmem:[%s2543_s6 + $0xf0] sm:$0xff] %vm1410_vm1, %v1406_v39 }
 0x2a0   :  { %v1409_v40 = vpop.xlane.xlu1 %1408 }
 0x2a1   :  { %1442 = vst.msk [vmem:[%s2543_s6 + $0xf8] sm:$0xff] %vm1410_vm1, %v1409_v40 }

</bundles_post_ra>
